<compile_context>
chip_gen: v7x
topology: tpu7x:2x2x1
jax: 0.10.0
libtpu: 0.0.40
codegen_flags: <defaults>
</compile_context>

<pallas_src>
import functools
import math

import numpy as np
import jax
import jax.numpy as jnp
from jax.experimental import pallas as pl
from jax.experimental.pallas import tpu as pltpu

_NEG = -1e30                     # finite "minus infinity" for additive masking
_INV_SQRT2 = 0.7071067811865476  # for exact (erf) GELU


def _bf16_eup_supported() -> bool:
    """bf16 transcendentals (EUP) are a win on v6e/v7x; keep f32 on v5e/older."""
    try:
        kind = jax.devices()[0].device_kind.lower()
    except Exception:
        return False
    return ('v6' in kind) or ('v7' in kind) or ('7x' in kind)


# ----------------------------------------------------------------------------
# Kernel: one post-norm TransformerEncoderLayer per grid step (l = layer index),
# processing BB batch elements (BB*S rows) at once.  The output block is resident
# across the layer axis and doubles as the running activation buffer.
# ----------------------------------------------------------------------------
def _layer_kernel(x_ref, mask_ref, hm_ref,
                  wqkv_ref, bqkv_ref, wo_ref, bo_ref,
                  w1_ref, b1_ref, w2_ref, b2_ref,
                  g1_ref, be1_ref, g2_ref, be2_ref,
                  o_ref, *, BB, S, D, heads, bf16_exp):
    l = pl.program_id(1)

    # Layer 0: seed the resident output block with the embedded input.
    @pl.when(l == 0)
    def _():
        o_ref[...] = x_ref[...]

    x = o_ref[...]                                        # (BB*S, D) f32
    xb = x.astype(jnp.bfloat16)

    # ---- fused QKV projection: single (BB*S, D) x (D, 3D) matmul, f32 accumulate
    qkv = jnp.dot(xb, wqkv_ref[0],
                  preferred_element_type=jnp.float32) + bqkv_ref[0]   # (BB*S, 3D)

    hm = hm_ref[...]                                      # (heads*S, D) 0/1 head-col mask
    hm16 = hm.astype(jnp.bfloat16)

    # ---- attention: all heads at once per batch element (expanded-Q trick) ----
    #   q_exp[(h,q), :] = q[q, :] masked to head-h columns
    #   scores[(h,q), k] = q_h . k_h        (full-D contraction; other cols are 0)
    #   ctx[q, c(head h)] = sum_k P_h[q,k] * v[k, c]  via masked block-sum
    ctx_rows = []
    for b in range(BB):                                   # BB==1 when num_batch_blocks==B
        r0 = b * S
        qb = qkv[r0:r0 + S, 0:D]                          # scale already folded into Wq
        kb = qkv[r0:r0 + S, D:2 * D].astype(jnp.bfloat16)
        vb = qkv[r0:r0 + S, 2 * D:3 * D].astype(jnp.bfloat16)

        q_exp = jnp.concatenate([qb] * heads, axis=0).astype(jnp.bfloat16) * hm16
        s = jax.lax.dot_general(q_exp, kb, (((1,), (1,)), ((), ())),
                                preferred_element_type=jnp.float32)   # (heads*S, S)
        maskb = mask_ref[b]                                            # (S, S) resident
        s = s + jnp.concatenate([maskb] * heads, axis=0)

        m = jnp.max(s, axis=-1, keepdims=True)
        z = s - m
        p = jnp.exp(z.astype(jnp.bfloat16)) if bf16_exp else jnp.exp(z)
        denom = jnp.sum(p.astype(jnp.float32), axis=-1, keepdims=True)
        ctx_un = jnp.dot(p.astype(jnp.bfloat16), vb,
                         preferred_element_type=jnp.float32)          # (heads*S, D)
        ctx_un = ctx_un * pl.reciprocal(denom, approx=True)
        ctx_un = ctx_un * hm                                          # zero other heads' cols
        acc = ctx_un[0:S, :]
        for h in range(1, heads):                                     # implicit head concat
            acc = acc + ctx_un[h * S:(h + 1) * S, :]
        ctx_rows.append(acc.astype(jnp.bfloat16))

    ctx = ctx_rows[0] if BB == 1 else jnp.concatenate(ctx_rows, axis=0)   # (BB*S, D) bf16

    # ---- single output projection over concatenated heads: (BB*S,D) x (D,D) ----
    attn = jnp.dot(ctx, wo_ref[0], preferred_element_type=jnp.float32) + bo_ref[0]

    # ---- residual + LayerNorm 1 (post-norm, eps=1e-5), single-pass stats ----
    h1 = x + attn
    mu = jnp.mean(h1, axis=-1, keepdims=True)
    ms = jnp.mean(h1 * h1, axis=-1, keepdims=True)
    var = jnp.maximum(ms - mu * mu, 0.0)
    h1 = (h1 - mu) * jax.lax.rsqrt(var + 1e-5) * g1_ref[0] + be1_ref[0]

    # ---- FFN: Linear -> exact (erf) GELU -> Linear ----
    f = jnp.dot(h1.astype(jnp.bfloat16), w1_ref[0],
                preferred_element_type=jnp.float32) + b1_ref[0]
    f = 0.5 * f * (1.0 + jax.lax.erf(f * _INV_SQRT2))     # kept f32 (exact-GELU fidelity)
    f = jnp.dot(f.astype(jnp.bfloat16), w2_ref[0],
                preferred_element_type=jnp.float32) + b2_ref[0]

    # ---- residual + LayerNorm 2 (single-pass stats) ----
    h2 = h1 + f
    mu2 = jnp.mean(h2, axis=-1, keepdims=True)
    ms2 = jnp.mean(h2 * h2, axis=-1, keepdims=True)
    var2 = jnp.maximum(ms2 - mu2 * mu2, 0.0)
    o_ref[...] = (h2 - mu2) * jax.lax.rsqrt(var2 + 1e-5) * g2_ref[0] + be2_ref[0]


_WEIGHT_ORDER = ('wqkv', 'bqkv', 'wo', 'bo', 'w1', 'b1', 'w2', 'b2',
                 'g1', 'be1', 'g2', 'be2')


def _encoder_stack(x2d, addmask, hmask, params, B, S, D, num_batch_blocks=1):
    heads, depth, ff = params['heads'], params['depth'], params['ff']
    nbb = num_batch_blocks
    assert B % nbb == 0
    BB = B // nbb
    rows = BB * S

    kernel = functools.partial(_layer_kernel, BB=BB, S=S, D=D, heads=heads,
                               bf16_exp=_bf16_eup_supported())
    weights = [params[n] for n in _WEIGHT_ORDER]

    w_idx = lambda bb, l: (l, 0, 0)
    in_specs = [
        pl.BlockSpec((rows, D), lambda bb, l: (bb, 0)),            # resident activations
        pl.BlockSpec((BB, S, S), lambda bb, l: (bb, 0, 0)),        # additive mask (resident across l)
        pl.BlockSpec((heads * S, D), lambda bb, l: (0, 0)),        # 0/1 head-column mask (constant)
    ] + [pl.BlockSpec((1,) + w.shape[1:], w_idx) for w in weights]

    # advisory cost estimate for XLA's scheduler
    macs = depth * B * (S * 3 * D * D          # QKV
                        + 2 * heads * S * S * D  # scores + PV (expanded-Q)
                        + S * D * D              # out proj
                        + 2 * S * D * ff)        # FFN
    transc = depth * B * (heads * S * S + S * ff)
    nbytes = sum(int(a.size) * a.dtype.itemsize
                 for a in [x2d, addmask, hmask] + weights) + int(x2d.size) * 4
    cost = pl.CostEstimate(flops=2 * macs, transcendentals=transc,
                           bytes_accessed=int(nbytes))

    return pl.pallas_call(
        kernel,
        out_shape=jax.ShapeDtypeStruct((B * S, D), jnp.float32),
        grid=(nbb, depth),
        in_specs=in_specs,
        out_specs=pl.BlockSpec((rows, D), lambda bb, l: (bb, 0)),
        compiler_params=pltpu.CompilerParams(
            dimension_semantics=("parallel", "arbitrary"),
            # NOTE: re-derive for v7x (64 MiB physical VMEM): resident in/out blocks
            # + double-buffered per-layer weights must stay well under the limit;
            # shrink BB (raise num_batch_blocks) before shrinking D-side tiles.
            vmem_limit_bytes=32 * 1024 * 1024),
        cost_estimate=cost,
    )(x2d, addmask, hmask, *weights)


# ----------------------------------------------------------------------------
# Parameter setup (deterministic synthetic init, PyTorch param shapes repacked
# into kernel-friendly layouts; matmul weights cast to bf16).
# ----------------------------------------------------------------------------
def _init_layer_params(key, D, heads, ff):
    hd = D // heads
    scale = 1.0 / math.sqrt(hd)
    ks = jax.random.split(key, 8)
    s = 0.02
    in_proj_w = jax.random.normal(ks[0], (3 * D, D), jnp.float32) * s   # (3D, D)
    in_proj_b = jax.random.normal(ks[1], (3 * D,), jnp.float32) * s
    wo = jax.random.normal(ks[2], (D, D), jnp.float32) * s              # out_proj.weight
    bo = jax.random.normal(ks[3], (D,), jnp.float32) * s
    w1 = jax.random.normal(ks[4], (ff, D), jnp.float32) * s             # linear1.weight
    b1 = jax.random.normal(ks[5], (ff,), jnp.float32) * s
    w2 = jax.random.normal(ks[6], (D, ff), jnp.float32) * s             # linear2.weight
    b2 = jax.random.normal(ks[7], (D,), jnp.float32) * s

    Wq, Wk, Wv = in_proj_w[:D], in_proj_w[D:2 * D], in_proj_w[2 * D:]
    bq, bk, bv = in_proj_b[:D], in_proj_b[D:2 * D], in_proj_b[2 * D:]
    # fold the 1/sqrt(head_dim) softmax scale into the query projection (f32, pre-cast)
    Wq = Wq * scale
    bq = bq * scale

    wqkv = jnp.concatenate([Wq.T, Wk.T, Wv.T], axis=1)                  # (D, 3D)
    bqkv = jnp.concatenate([bq, bk, bv]).reshape(1, 3 * D)

    return dict(
        wqkv=wqkv, bqkv=bqkv,
        wo=wo.T, bo=bo.reshape(1, D),
        w1=w1.T, b1=b1.reshape(1, ff),
        w2=w2.T, b2=b2.reshape(1, D),
        g1=jnp.ones((1, D), jnp.float32), be1=jnp.zeros((1, D), jnp.float32),
        g2=jnp.ones((1, D), jnp.float32), be2=jnp.zeros((1, D), jnp.float32),
    )


_BF16_KEYS = ('wqkv', 'wo', 'w1', 'w2')


def init_encoder_params(key, dim, depth, heads, ffn_mult,
                        max_time_patches, max_space_patches):
    ff = int(dim * ffn_mult)
    keys = jax.random.split(key, depth + 2)
    layers = [_init_layer_params(keys[i], dim, heads, ff) for i in range(depth)]
    stacked = {k: jnp.stack([lp[k] for lp in layers], axis=0) for k in layers[0]}
    for k in _BF16_KEYS:                     # bf16 on the MXU, f32 accumulate in-kernel
        stacked[k] = stacked[k].astype(jnp.bfloat16)
    # allow_embed_padding=False (default) -> Embedding(max_*, dim)
    time_emb = jax.random.normal(keys[depth], (max_time_patches, dim), jnp.float32)
    space_emb = jax.random.normal(keys[depth + 1], (max_space_patches, dim), jnp.float32)
    return dict(stacked, time_emb=time_emb, space_emb=space_emb,
                heads=heads, dim=dim, depth=depth, ff=ff)


# ----------------------------------------------------------------------------
# Glue: padding mask, positional encoding, ctx concat, additive mask precompute.
# ----------------------------------------------------------------------------
def encoder_forward(params, encoder_input, ctx_emb, batch, num_batch_blocks=1):
    times = batch['time_idx']                                       # (B, T) int32
    spaces = batch['space_idx']
    B, T, D = encoder_input.shape
    C = ctx_emb.shape[1]
    S = T + C
    heads = params['heads']
    hd = D // heads

    # get_temporal_padding_mask (no 'shuffle' in batch)
    token_position = jnp.arange(T, dtype=jnp.int32)[None, :]
    token_length = jnp.sum(batch['spike_tokens_mask'], axis=1, keepdims=True)
    pad_mask = token_position >= token_length                       # (B, T) bool

    # dropout_in: identity (eval).  Positional encoding = embedding gathers (glue).
    pos = params['time_emb'][times] + params['space_emb'][spaces]   # (B, T, D)
    src = encoder_input + pos
    src = jnp.concatenate([src, ctx_emb], axis=1)                   # (B, S, D)

    # Additive (B,S,S) mask, precomputed once (resident in VMEM across layers):
    #   src query vs src key : allowed iff t_q >= t_k      (make_src_mask)
    #   any query vs ctx key : always allowed              (ctx key time = -2^30)
    #   ctx query vs src key : blocked                     (ctx query time = -1)
    #   padded src keys      : blocked for every query     (key-padding mask)
    ti = times.astype(jnp.int32)
    qt = jnp.concatenate([ti, jnp.full((B, C), -1, jnp.int32)], axis=1)
    kt = jnp.concatenate([ti, jnp.full((B, C), -(2 ** 30), jnp.int32)], axis=1)
    allowed = qt[:, :, None] >= kt[:, None, :]                      # (B, S, S)
    kpad = jnp.concatenate(
        [jnp.where(pad_mask, jnp.float32(_NEG), jnp.float32(0.0)),
         jnp.zeros((B, C), jnp.float32)], axis=1)
    addmask = jnp.where(allowed, jnp.float32(0.0), jnp.float32(_NEG)) + kpad[:, None, :]

    # 0/1 head-column mask for the expanded-Q trick: row block h <-> columns of head h
    row_head = np.repeat(np.arange(heads), S)                       # (heads*S,)
    col_head = np.repeat(np.arange(heads), hd)                      # (D,)
    hmask = jnp.asarray((row_head[:, None] == col_head[None, :]).astype(np.float32))

    x2d = src.reshape(B * S, D).astype(jnp.float32)
    y2d = _encoder_stack(x2d, addmask, hmask, params, B, S, D, num_batch_blocks)
    y = y2d.reshape(B, S, D)

    # drop the ctx tokens; dropout_out: identity
    return y[:, :T]


# ----------------------------------------------------------------------------
if __name__ == "__main__":
    B, T, C = 2, 14, 2            # batch, src seq len, number of ctx tokens -> S = 16
    D, HEADS, DEPTH = 32, 4, 2
    FFN_MULT = 2
    MAX_TIME, MAX_SPACE = 16, 8

    key = jax.random.PRNGKey(0)
    kp, kx, kc = jax.random.split(key, 3)

    params = init_encoder_params(kp, D, DEPTH, HEADS, FFN_MULT, MAX_TIME, MAX_SPACE)

    encoder_input = jax.random.normal(kx, (B, T, D), jnp.float32)
    ctx_emb = jax.random.normal(kc, (B, C, D), jnp.float32)

    time_idx = jnp.broadcast_to(jnp.arange(T, dtype=jnp.int32) // 2, (B, T))
    space_idx = jnp.broadcast_to(jnp.arange(T, dtype=jnp.int32) % MAX_SPACE, (B, T))
    spike_tokens_mask = jnp.concatenate(
        [jnp.ones((1, T), jnp.float32),
         jnp.concatenate([jnp.ones((1, T - 2), jnp.float32),
                          jnp.zeros((1, 2), jnp.float32)], axis=1)],
        axis=0)                   # row 1 has two padded tokens

    batch = {
        'time_idx': time_idx,
        'space_idx': space_idx,
        'spike_tokens_mask': spike_tokens_mask,
    }

    # num_batch_blocks=1: whole batch per grid step (best for single-TC v5e/v6e at
    # small B).  At realistic batch sizes set num_batch_blocks=B so the batch becomes
    # the grid axis (BB=1: bounded live ranges; on v7x the 'parallel' axis can then
    # feed both TensorCores).
    out = encoder_forward(params, encoder_input, ctx_emb, batch, num_batch_blocks=1)
    out = jax.block_until_ready(out)

    assert out.shape == (B, T, D), out.shape
    assert bool(jnp.all(jnp.isfinite(out)))
    # TODO(synk): dropout layers are treated as identity (inference mode); no RNG dropout in-kernel.
    print("KERNEL_OK")
</pallas_src>

<mosaic_0001>
module attributes {stable_mosaic.version = 11 : i64} {
  func.func @_layer_kernel(%arg0: i32, %arg1: i32, %arg2: memref<32x32xf32, #tpu.memory_space<vmem>>, %arg3: memref<2x16x16xf32, #tpu.memory_space<vmem>>, %arg4: memref<64x32xf32, #tpu.memory_space<vmem>>, %arg5: memref<1x32x96xbf16, #tpu.memory_space<vmem>>, %arg6: memref<1x1x96xf32, #tpu.memory_space<vmem>>, %arg7: memref<1x32x32xbf16, #tpu.memory_space<vmem>>, %arg8: memref<1x1x32xf32, #tpu.memory_space<vmem>>, %arg9: memref<1x32x64xbf16, #tpu.memory_space<vmem>>, %arg10: memref<1x1x64xf32, #tpu.memory_space<vmem>>, %arg11: memref<1x64x32xbf16, #tpu.memory_space<vmem>>, %arg12: memref<1x1x32xf32, #tpu.memory_space<vmem>>, %arg13: memref<1x1x32xf32, #tpu.memory_space<vmem>>, %arg14: memref<1x1x32xf32, #tpu.memory_space<vmem>>, %arg15: memref<1x1x32xf32, #tpu.memory_space<vmem>>, %arg16: memref<1x1x32xf32, #tpu.memory_space<vmem>>, %arg17: memref<32x32xf32, #tpu.memory_space<vmem>>) attributes {dimension_semantics = [#tpu.dimension_semantics<parallel>, #tpu.dimension_semantics<arbitrary>], iteration_bounds = array<i64: 1, 2>, scalar_prefetch = 0 : i64, scratch_operands = 0 : i64, tpu.core_type = #tpu.core_type<tc>, window_params = [{transform_indices = @transform_0, window_bounds = array<i64: 32, 32>}, {transform_indices = @transform_1, window_bounds = array<i64: 2, 16, 16>}, {pipeline_mode = #tpu.pipeline_mode<synchronous>, transform_indices = @transform_2, window_bounds = array<i64: 64, 32>}, {transform_indices = @transform_3, window_bounds = array<i64: 1, 32, 96>}, {transform_indices = @transform_4, window_bounds = array<i64: 1, 1, 96>}, {transform_indices = @transform_5, window_bounds = array<i64: 1, 32, 32>}, {transform_indices = @transform_6, window_bounds = array<i64: 1, 1, 32>}, {transform_indices = @transform_7, window_bounds = array<i64: 1, 32, 64>}, {transform_indices = @transform_8, window_bounds = array<i64: 1, 1, 64>}, {transform_indices = @transform_9, window_bounds = array<i64: 1, 64, 32>}, {transform_indices = @transform_10, window_bounds = array<i64: 1, 1, 32>}, {transform_indices = @transform_11, window_bounds = array<i64: 1, 1, 32>}, {transform_indices = @transform_12, window_bounds = array<i64: 1, 1, 32>}, {transform_indices = @transform_13, window_bounds = array<i64: 1, 1, 32>}, {transform_indices = @transform_14, window_bounds = array<i64: 1, 1, 32>}, {transform_indices = @transform_15, window_bounds = array<i64: 32, 32>}]} {
    %c0_i32 = arith.constant 0 : i32
    %0 = arith.cmpi eq, %arg1, %c0_i32 : i32
    %1 = arith.extui %0 : i1 to i32
    %c0_i32_0 = arith.constant 0 : i32
    %2 = arith.cmpi ne, %1, %c0_i32_0 : i32
    scf.if %2 {
      %c0_73 = arith.constant 0 : index
      %c0_74 = arith.constant 0 : index
      %173 = vector.load %arg2[%c0_73, %c0_74] : memref<32x32xf32, #tpu.memory_space<vmem>>, vector<32x32xf32>
      %c0_75 = arith.constant 0 : index
      %c0_76 = arith.constant 0 : index
      %174 = vector.load %arg17[%c0_75, %c0_76] : memref<32x32xf32, #tpu.memory_space<vmem>>, vector<32x32xf32>
      tpu.vector_store %arg17[%c0_75, %c0_76], %173 {strides = array<i32>} : memref<32x32xf32, #tpu.memory_space<vmem>>, vector<32x32xf32>,
    } else {
    }
    %c0 = arith.constant 0 : index
    %c0_1 = arith.constant 0 : index
    %3 = vector.load %arg17[%c0, %c0_1] : memref<32x32xf32, #tpu.memory_space<vmem>>, vector<32x32xf32>
    %4 = arith.truncf %3 : vector<32x32xf32> to vector<32x32xbf16>
    %c0_2 = arith.constant 0 : index
    %c0_3 = arith.constant 0 : index
    %c0_4 = arith.constant 0 : index
    %5 = vector.load %arg5[%c0_2, %c0_3, %c0_4] : memref<1x32x96xbf16, #tpu.memory_space<vmem>>, vector<1x32x96xbf16>
    %6 = vector.shape_cast %5 : vector<1x32x96xbf16> to vector<32x96xbf16>
    %cst = arith.constant dense<0.000000e+00> : vector<32x96xf32>
    %7 = tpu.matmul %4, %6, %cst {dimension_numbers = #tpu.dot_dimension_numbers<[1], [0], [0], [1], [0, 0, 1, 1], [], []>} : vector<32x32xbf16>, vector<32x96xbf16>, vector<32x96xf32> -> vector<32x96xf32>
    %c0_5 = arith.constant 0 : index
    %c0_6 = arith.constant 0 : index
    %c0_7 = arith.constant 0 : index
    %8 = vector.load %arg6[%c0_5, %c0_6, %c0_7] : memref<1x1x96xf32, #tpu.memory_space<vmem>>, vector<1x1x96xf32>
    %9 = vector.shape_cast %8 : vector<1x1x96xf32> to vector<1x96xf32>
    %10 = vector.broadcast %9 : vector<1x96xf32> to vector<32x96xf32>
    %11 = arith.addf %7, %10 : vector<32x96xf32>
    %c0_8 = arith.constant 0 : index
    %c0_9 = arith.constant 0 : index
    %12 = vector.load %arg4[%c0_8, %c0_9] : memref<64x32xf32, #tpu.memory_space<vmem>>, vector<64x32xf32>
    %13 = arith.truncf %12 : vector<64x32xf32> to vector<64x32xbf16>
    %14 = vector.extract_strided_slice %11 {offsets = [0, 0], sizes = [16, 32], strides = [1, 1]} : vector<32x96xf32> to vector<16x32xf32>
    %15 = vector.extract_strided_slice %11 {offsets = [0, 32], sizes = [16, 32], strides = [1, 1]} : vector<32x96xf32> to vector<16x32xf32>
    %16 = arith.truncf %15 : vector<16x32xf32> to vector<16x32xbf16>
    %17 = vector.extract_strided_slice %11 {offsets = [0, 64], sizes = [16, 32], strides = [1, 1]} : vector<32x96xf32> to vector<16x32xf32>
    %18 = arith.truncf %17 : vector<16x32xf32> to vector<16x32xbf16>
    %19 = tpu.concatenate %14, %14, %14, %14 in 0 : vector<16x32xf32>, vector<16x32xf32>, vector<16x32xf32>, vector<16x32xf32> -> vector<64x32xf32>
    %20 = arith.truncf %19 : vector<64x32xf32> to vector<64x32xbf16>
    %21 = arith.mulf %20, %13 : vector<64x32xbf16>
    %cst_10 = arith.constant dense<0.000000e+00> : vector<64x16xf32>
    %22 = tpu.matmul %21, %16, %cst_10 {dimension_numbers = #tpu.dot_dimension_numbers<[1], [1], [0], [0], [0, 0, 1, 0], [], []>} : vector<64x32xbf16>, vector<16x32xbf16>, vector<64x16xf32> -> vector<64x16xf32>
    %c0_11 = arith.constant 0 : index
    %c0_12 = arith.constant 0 : index
    %c0_13 = arith.constant 0 : index
    %23 = vector.load %arg3[%c0_11, %c0_12, %c0_13] : memref<2x16x16xf32, #tpu.memory_space<vmem>>, vector<1x16x16xf32>
    %24 = vector.shape_cast %23 : vector<1x16x16xf32> to vector<16x16xf32>
    %25 = tpu.concatenate %24, %24, %24, %24 in 0 : vector<16x16xf32>, vector<16x16xf32>, vector<16x16xf32>, vector<16x16xf32> -> vector<64x16xf32>
    %26 = arith.addf %22, %25 : vector<64x16xf32>
    %cst_14 = arith.constant dense<0xFF800000> : vector<64xf32>
    %27 = vector.multi_reduction <maximumf>, %26, %cst_14 [1] : vector<64x16xf32> to vector<64xf32>
    %28 = vector.shape_cast %27 : vector<64xf32> to vector<64x1xf32>
    %29 = vector.broadcast %28 : vector<64x1xf32> to vector<64x16xf32>
    %30 = arith.subf %26, %29 : vector<64x16xf32>
    %31 = math.exp %30 : vector<64x16xf32>
    %cst_15 = arith.constant dense<0.000000e+00> : vector<64xf32>
    %32 = vector.multi_reduction <add>, %31, %cst_15 [1] : vector<64x16xf32> to vector<64xf32>
    %33 = vector.shape_cast %32 : vector<64xf32> to vector<64x1xf32>
    %34 = arith.truncf %31 : vector<64x16xf32> to vector<64x16xbf16>
    %cst_16 = arith.constant dense<0.000000e+00> : vector<64x32xf32>
    %35 = tpu.matmul %34, %18, %cst_16 {dimension_numbers = #tpu.dot_dimension_numbers<[1], [0], [0], [1], [0, 0, 1, 1], [], []>} : vector<64x16xbf16>, vector<16x32xbf16>, vector<64x32xf32> -> vector<64x32xf32>
    %36 = tpu.reciprocal %33 {approx = true} : vector<64x1xf32> -> vector<64x1xf32>
    %37 = vector.broadcast %36 : vector<64x1xf32> to vector<64x32xf32>
    %38 = arith.mulf %35, %37 : vector<64x32xf32>
    %39 = arith.mulf %38, %12 : vector<64x32xf32>
    %40 = vector.extract_strided_slice %39 {offsets = [0, 0], sizes = [16, 32], strides = [1, 1]} : vector<64x32xf32> to vector<16x32xf32>
    %41 = vector.extract_strided_slice %39 {offsets = [16, 0], sizes = [16, 32], strides = [1, 1]} : vector<64x32xf32> to vector<16x32xf32>
    %42 = arith.addf %40, %41 : vector<16x32xf32>
    %43 = vector.extract_strided_slice %39 {offsets = [32, 0], sizes = [16, 32], strides = [1, 1]} : vector<64x32xf32> to vector<16x32xf32>
    %44 = arith.addf %42, %43 : vector<16x32xf32>
    %45 = vector.extract_strided_slice %39 {offsets = [48, 0], sizes = [16, 32], strides = [1, 1]} : vector<64x32xf32> to vector<16x32xf32>
    %46 = arith.addf %44, %45 : vector<16x32xf32>
    %47 = arith.truncf %46 : vector<16x32xf32> to vector<16x32xbf16>
    %48 = vector.extract_strided_slice %11 {offsets = [16, 0], sizes = [16, 32], strides = [1, 1]} : vector<32x96xf32> to vector<16x32xf32>
    %49 = vector.extract_strided_slice %11 {offsets = [16, 32], sizes = [16, 32], strides = [1, 1]} : vector<32x96xf32> to vector<16x32xf32>
    %50 = arith.truncf %49 : vector<16x32xf32> to vector<16x32xbf16>
    %51 = vector.extract_strided_slice %11 {offsets = [16, 64], sizes = [16, 32], strides = [1, 1]} : vector<32x96xf32> to vector<16x32xf32>
    %52 = arith.truncf %51 : vector<16x32xf32> to vector<16x32xbf16>
    %53 = tpu.concatenate %48, %48, %48, %48 in 0 : vector<16x32xf32>, vector<16x32xf32>, vector<16x32xf32>, vector<16x32xf32> -> vector<64x32xf32>
    %54 = arith.truncf %53 : vector<64x32xf32> to vector<64x32xbf16>
    %55 = arith.mulf %54, %13 : vector<64x32xbf16>
    %cst_17 = arith.constant dense<0.000000e+00> : vector<64x16xf32>
    %56 = tpu.matmul %55, %50, %cst_17 {dimension_numbers = #tpu.dot_dimension_numbers<[1], [1], [0], [0], [0, 0, 1, 0], [], []>} : vector<64x32xbf16>, vector<16x32xbf16>, vector<64x16xf32> -> vector<64x16xf32>
    %c1 = arith.constant 1 : index
    %c0_18 = arith.constant 0 : index
    %c0_19 = arith.constant 0 : index
    %57 = vector.load %arg3[%c1, %c0_18, %c0_19] : memref<2x16x16xf32, #tpu.memory_space<vmem>>, vector<1x16x16xf32>
    %58 = vector.shape_cast %57 : vector<1x16x16xf32> to vector<16x16xf32>
    %59 = tpu.concatenate %58, %58, %58, %58 in 0 : vector<16x16xf32>, vector<16x16xf32>, vector<16x16xf32>, vector<16x16xf32> -> vector<64x16xf32>
    %60 = arith.addf %56, %59 : vector<64x16xf32>
    %cst_20 = arith.constant dense<0xFF800000> : vector<64xf32>
    %61 = vector.multi_reduction <maximumf>, %60, %cst_20 [1] : vector<64x16xf32> to vector<64xf32>
    %62 = vector.shape_cast %61 : vector<64xf32> to vector<64x1xf32>
    %63 = vector.broadcast %62 : vector<64x1xf32> to vector<64x16xf32>
    %64 = arith.subf %60, %63 : vector<64x16xf32>
    %65 = math.exp %64 : vector<64x16xf32>
    %cst_21 = arith.constant dense<0.000000e+00> : vector<64xf32>
    %66 = vector.multi_reduction <add>, %65, %cst_21 [1] : vector<64x16xf32> to vector<64xf32>
    %67 = vector.shape_cast %66 : vector<64xf32> to vector<64x1xf32>
    %68 = arith.truncf %65 : vector<64x16xf32> to vector<64x16xbf16>
    %cst_22 = arith.constant dense<0.000000e+00> : vector<64x32xf32>
    %69 = tpu.matmul %68, %52, %cst_22 {dimension_numbers = #tpu.dot_dimension_numbers<[1], [0], [0], [1], [0, 0, 1, 1], [], []>} : vector<64x16xbf16>, vector<16x32xbf16>, vector<64x32xf32> -> vector<64x32xf32>
    %70 = tpu.reciprocal %67 {approx = true} : vector<64x1xf32> -> vector<64x1xf32>
    %71 = vector.broadcast %70 : vector<64x1xf32> to vector<64x32xf32>
    %72 = arith.mulf %69, %71 : vector<64x32xf32>
    %73 = arith.mulf %72, %12 : vector<64x32xf32>
    %74 = vector.extract_strided_slice %73 {offsets = [0, 0], sizes = [16, 32], strides = [1, 1]} : vector<64x32xf32> to vector<16x32xf32>
    %75 = vector.extract_strided_slice %73 {offsets = [16, 0], sizes = [16, 32], strides = [1, 1]} : vector<64x32xf32> to vector<16x32xf32>
    %76 = arith.addf %74, %75 : vector<16x32xf32>
    %77 = vector.extract_strided_slice %73 {offsets = [32, 0], sizes = [16, 32], strides = [1, 1]} : vector<64x32xf32> to vector<16x32xf32>
    %78 = arith.addf %76, %77 : vector<16x32xf32>
    %79 = vector.extract_strided_slice %73 {offsets = [48, 0], sizes = [16, 32], strides = [1, 1]} : vector<64x32xf32> to vector<16x32xf32>
    %80 = arith.addf %78, %79 : vector<16x32xf32>
    %81 = arith.truncf %80 : vector<16x32xf32> to vector<16x32xbf16>
    %82 = tpu.concatenate %47, %81 in 0 : vector<16x32xbf16>, vector<16x32xbf16> -> vector<32x32xbf16>
    %c0_23 = arith.constant 0 : index
    %c0_24 = arith.constant 0 : index
    %c0_25 = arith.constant 0 : index
    %83 = vector.load %arg7[%c0_23, %c0_24, %c0_25] : memref<1x32x32xbf16, #tpu.memory_space<vmem>>, vector<1x32x32xbf16>
    %84 = vector.shape_cast %83 : vector<1x32x32xbf16> to vector<32x32xbf16>
    %cst_26 = arith.constant dense<0.000000e+00> : vector<32x32xf32>
    %85 = tpu.matmul %82, %84, %cst_26 {dimension_numbers = #tpu.dot_dimension_numbers<[1], [0], [0], [1], [0, 0, 1, 1], [], []>} : vector<32x32xbf16>, vector<32x32xbf16>, vector<32x32xf32> -> vector<32x32xf32>
    %c0_27 = arith.constant 0 : index
    %c0_28 = arith.constant 0 : index
    %c0_29 = arith.constant 0 : index
    %86 = vector.load %arg8[%c0_27, %c0_28, %c0_29] : memref<1x1x32xf32, #tpu.memory_space<vmem>>, vector<1x1x32xf32>
    %87 = vector.shape_cast %86 : vector<1x1x32xf32> to vector<1x32xf32>
    %88 = vector.broadcast %87 : vector<1x32xf32> to vector<32x32xf32>
    %89 = arith.addf %85, %88 : vector<32x32xf32>
    %90 = arith.addf %3, %89 : vector<32x32xf32>
    %cst_30 = arith.constant dense<0.000000e+00> : vector<32xf32>
    %91 = vector.multi_reduction <add>, %90, %cst_30 [1] : vector<32x32xf32> to vector<32xf32>
    %92 = vector.shape_cast %91 : vector<32xf32> to vector<32x1xf32>
    %cst_31 = arith.constant 3.200000e+01 : f32
    %93 = vector.broadcast %cst_31 : f32 to vector<32x1xf32>
    %94 = arith.divf %92, %93 : vector<32x1xf32>
    %95 = arith.mulf %90, %90 : vector<32x32xf32>
    %cst_32 = arith.constant dense<0.000000e+00> : vector<32xf32>
    %96 = vector.multi_reduction <add>, %95, %cst_32 [1] : vector<32x32xf32> to vector<32xf32>
    %97 = vector.shape_cast %96 : vector<32xf32> to vector<32x1xf32>
    %cst_33 = arith.constant 3.200000e+01 : f32
    %98 = vector.broadcast %cst_33 : f32 to vector<32x1xf32>
    %99 = arith.divf %97, %98 : vector<32x1xf32>
    %100 = arith.mulf %94, %94 : vector<32x1xf32>
    %101 = arith.subf %99, %100 : vector<32x1xf32>
    %cst_34 = arith.constant 0.000000e+00 : f32
    %102 = vector.broadcast %cst_34 : f32 to vector<32x1xf32>
    %103 = arith.maximumf %101, %102 : vector<32x1xf32>
    %104 = vector.broadcast %94 : vector<32x1xf32> to vector<32x32xf32>
    %105 = arith.subf %90, %104 : vector<32x32xf32>
    %cst_35 = arith.constant 9.99999974E-6 : f32
    %106 = vector.broadcast %cst_35 : f32 to vector<32x1xf32>
    %107 = arith.addf %103, %106 : vector<32x1xf32>
    %108 = math.rsqrt %107 : vector<32x1xf32>
    %109 = vector.broadcast %108 : vector<32x1xf32> to vector<32x32xf32>
    %110 = arith.mulf %105, %109 : vector<32x32xf32>
    %c0_36 = arith.constant 0 : index
    %c0_37 = arith.constant 0 : index
    %c0_38 = arith.constant 0 : index
    %111 = vector.load %arg13[%c0_36, %c0_37, %c0_38] : memref<1x1x32xf32, #tpu.memory_space<vmem>>, vector<1x1x32xf32>
    %112 = vector.shape_cast %111 : vector<1x1x32xf32> to vector<1x32xf32>
    %113 = vector.broadcast %112 : vector<1x32xf32> to vector<32x32xf32>
    %114 = arith.mulf %110, %113 : vector<32x32xf32>
    %c0_39 = arith.constant 0 : index
    %c0_40 = arith.constant 0 : index
    %c0_41 = arith.constant 0 : index
    %115 = vector.load %arg14[%c0_39, %c0_40, %c0_41] : memref<1x1x32xf32, #tpu.memory_space<vmem>>, vector<1x1x32xf32>
    %116 = vector.shape_cast %115 : vector<1x1x32xf32> to vector<1x32xf32>
    %117 = vector.broadcast %116 : vector<1x32xf32> to vector<32x32xf32>
    %118 = arith.addf %114, %117 : vector<32x32xf32>
    %119 = arith.truncf %118 : vector<32x32xf32> to vector<32x32xbf16>
    %c0_42 = arith.constant 0 : index
    %c0_43 = arith.constant 0 : index
    %c0_44 = arith.constant 0 : index
    %120 = vector.load %arg9[%c0_42, %c0_43, %c0_44] : memref<1x32x64xbf16, #tpu.memory_space<vmem>>, vector<1x32x64xbf16>
    %121 = vector.shape_cast %120 : vector<1x32x64xbf16> to vector<32x64xbf16>
    %cst_45 = arith.constant dense<0.000000e+00> : vector<32x64xf32>
    %122 = tpu.matmul %119, %121, %cst_45 {dimension_numbers = #tpu.dot_dimension_numbers<[1], [0], [0], [1], [0, 0, 1, 1], [], []>} : vector<32x32xbf16>, vector<32x64xbf16>, vector<32x64xf32> -> vector<32x64xf32>
    %c0_46 = arith.constant 0 : index
    %c0_47 = arith.constant 0 : index
    %c0_48 = arith.constant 0 : index
    %123 = vector.load %arg10[%c0_46, %c0_47, %c0_48] : memref<1x1x64xf32, #tpu.memory_space<vmem>>, vector<1x1x64xf32>
    %124 = vector.shape_cast %123 : vector<1x1x64xf32> to vector<1x64xf32>
    %125 = vector.broadcast %124 : vector<1x64xf32> to vector<32x64xf32>
    %126 = arith.addf %122, %125 : vector<32x64xf32>
    %cst_49 = arith.constant 5.000000e-01 : f32
    %127 = vector.broadcast %cst_49 : f32 to vector<32x64xf32>
    %128 = arith.mulf %127, %126 : vector<32x64xf32>
    %cst_50 = arith.constant 0.707106769 : f32
    %129 = vector.broadcast %cst_50 : f32 to vector<32x64xf32>
    %130 = arith.mulf %126, %129 : vector<32x64xf32>
    %131 = math.erf %130 : vector<32x64xf32>
    %cst_51 = arith.constant 1.000000e+00 : f32
    %132 = vector.broadcast %cst_51 : f32 to vector<32x64xf32>
    %133 = arith.addf %132, %131 : vector<32x64xf32>
    %134 = arith.mulf %128, %133 : vector<32x64xf32>
    %135 = arith.truncf %134 : vector<32x64xf32> to vector<32x64xbf16>
    %c0_52 = arith.constant 0 : index
    %c0_53 = arith.constant 0 : index
    %c0_54 = arith.constant 0 : index
    %136 = vector.load %arg11[%c0_52, %c0_53, %c0_54] : memref<1x64x32xbf16, #tpu.memory_space<vmem>>, vector<1x64x32xbf16>
    %137 = vector.shape_cast %136 : vector<1x64x32xbf16> to vector<64x32xbf16>
    %cst_55 = arith.constant dense<0.000000e+00> : vector<32x32xf32>
    %138 = tpu.matmul %135, %137, %cst_55 {dimension_numbers = #tpu.dot_dimension_numbers<[1], [0], [0], [1], [0, 0, 1, 1], [], []>} : vector<32x64xbf16>, vector<64x32xbf16>, vector<32x32xf32> -> vector<32x32xf32>
    %c0_56 = arith.constant 0 : index
    %c0_57 = arith.constant 0 : index
    %c0_58 = arith.constant 0 : index
    %139 = vector.load %arg12[%c0_56, %c0_57, %c0_58] : memref<1x1x32xf32, #tpu.memory_space<vmem>>, vector<1x1x32xf32>
    %140 = vector.shape_cast %139 : vector<1x1x32xf32> to vector<1x32xf32>
    %141 = vector.broadcast %140 : vector<1x32xf32> to vector<32x32xf32>
    %142 = arith.addf %138, %141 : vector<32x32xf32>
    %143 = arith.addf %118, %142 : vector<32x32xf32>
    %cst_59 = arith.constant dense<0.000000e+00> : vector<32xf32>
    %144 = vector.multi_reduction <add>, %143, %cst_59 [1] : vector<32x32xf32> to vector<32xf32>
    %145 = vector.shape_cast %144 : vector<32xf32> to vector<32x1xf32>
    %cst_60 = arith.constant 3.200000e+01 : f32
    %146 = vector.broadcast %cst_60 : f32 to vector<32x1xf32>
    %147 = arith.divf %145, %146 : vector<32x1xf32>
    %148 = arith.mulf %143, %143 : vector<32x32xf32>
    %cst_61 = arith.constant dense<0.000000e+00> : vector<32xf32>
    %149 = vector.multi_reduction <add>, %148, %cst_61 [1] : vector<32x32xf32> to vector<32xf32>
    %150 = vector.shape_cast %149 : vector<32xf32> to vector<32x1xf32>
    %cst_62 = arith.constant 3.200000e+01 : f32
    %151 = vector.broadcast %cst_62 : f32 to vector<32x1xf32>
    %152 = arith.divf %150, %151 : vector<32x1xf32>
    %153 = arith.mulf %147, %147 : vector<32x1xf32>
    %154 = arith.subf %152, %153 : vector<32x1xf32>
    %cst_63 = arith.constant 0.000000e+00 : f32
    %155 = vector.broadcast %cst_63 : f32 to vector<32x1xf32>
    %156 = arith.maximumf %154, %155 : vector<32x1xf32>
    %157 = vector.broadcast %147 : vector<32x1xf32> to vector<32x32xf32>
    %158 = arith.subf %143, %157 : vector<32x32xf32>
    %cst_64 = arith.constant 9.99999974E-6 : f32
    %159 = vector.broadcast %cst_64 : f32 to vector<32x1xf32>
    %160 = arith.addf %156, %159 : vector<32x1xf32>
    %161 = math.rsqrt %160 : vector<32x1xf32>
    %162 = vector.broadcast %161 : vector<32x1xf32> to vector<32x32xf32>
    %163 = arith.mulf %158, %162 : vector<32x32xf32>
    %c0_65 = arith.constant 0 : index
    %c0_66 = arith.constant 0 : index
    %c0_67 = arith.constant 0 : index
    %164 = vector.load %arg15[%c0_65, %c0_66, %c0_67] : memref<1x1x32xf32, #tpu.memory_space<vmem>>, vector<1x1x32xf32>
    %165 = vector.shape_cast %164 : vector<1x1x32xf32> to vector<1x32xf32>
    %166 = vector.broadcast %165 : vector<1x32xf32> to vector<32x32xf32>
    %167 = arith.mulf %163, %166 : vector<32x32xf32>
    %c0_68 = arith.constant 0 : index
    %c0_69 = arith.constant 0 : index
    %c0_70 = arith.constant 0 : index
    %168 = vector.load %arg16[%c0_68, %c0_69, %c0_70] : memref<1x1x32xf32, #tpu.memory_space<vmem>>, vector<1x1x32xf32>
    %169 = vector.shape_cast %168 : vector<1x1x32xf32> to vector<1x32xf32>
    %170 = vector.broadcast %169 : vector<1x32xf32> to vector<32x32xf32>
    %171 = arith.addf %167, %170 : vector<32x32xf32>
    %c0_71 = arith.constant 0 : index
    %c0_72 = arith.constant 0 : index
    %172 = vector.load %arg17[%c0_71, %c0_72] : memref<32x32xf32, #tpu.memory_space<vmem>>, vector<32x32xf32>
    tpu.vector_store %arg17[%c0_71, %c0_72], %171 {strides = array<i32>} : memref<32x32xf32, #tpu.memory_space<vmem>>, vector<32x32xf32>,
    return
  }
  func.func @transform_0(%arg0: i32, %arg1: i32) -> (i32, i32) {
    %c0_i32 = arith.constant 0 : i32
    %c0_i32_0 = arith.constant 0 : i32
    return %arg0, %c0_i32 : i32, i32
  }
  func.func @transform_1(%arg0: i32, %arg1: i32) -> (i32, i32, i32) {
    %c0_i32 = arith.constant 0 : i32
    %c0_i32_0 = arith.constant 0 : i32
    %c0_i32_1 = arith.constant 0 : i32
    return %arg0, %c0_i32, %c0_i32_0 : i32, i32, i32
  }
  func.func @transform_2(%arg0: i32, %arg1: i32) -> (i32, i32) {
    %c0_i32 = arith.constant 0 : i32
    %c0_i32_0 = arith.constant 0 : i32
    %c0_i32_1 = arith.constant 0 : i32
    return %c0_i32, %c0_i32_0 : i32, i32
  }
  func.func @transform_3(%arg0: i32, %arg1: i32) -> (i32, i32, i32) {
    %c0_i32 = arith.constant 0 : i32
    %c0_i32_0 = arith.constant 0 : i32
    %c0_i32_1 = arith.constant 0 : i32
    return %arg1, %c0_i32, %c0_i32_0 : i32, i32, i32
  }
  func.func @transform_4(%arg0: i32, %arg1: i32) -> (i32, i32, i32) {
    %c0_i32 = arith.constant 0 : i32
    %c0_i32_0 = arith.constant 0 : i32
    %c0_i32_1 = arith.constant 0 : i32
    return %arg1, %c0_i32, %c0_i32_0 : i32, i32, i32
  }
  func.func @transform_5(%arg0: i32, %arg1: i32) -> (i32, i32, i32) {
    %c0_i32 = arith.constant 0 : i32
    %c0_i32_0 = arith.constant 0 : i32
    %c0_i32_1 = arith.constant 0 : i32
    return %arg1, %c0_i32, %c0_i32_0 : i32, i32, i32
  }
  func.func @transform_6(%arg0: i32, %arg1: i32) -> (i32, i32, i32) {
    %c0_i32 = arith.constant 0 : i32
    %c0_i32_0 = arith.constant 0 : i32
    %c0_i32_1 = arith.constant 0 : i32
    return %arg1, %c0_i32, %c0_i32_0 : i32, i32, i32
  }
  func.func @transform_7(%arg0: i32, %arg1: i32) -> (i32, i32, i32) {
    %c0_i32 = arith.constant 0 : i32
    %c0_i32_0 = arith.constant 0 : i32
    %c0_i32_1 = arith.constant 0 : i32
    return %arg1, %c0_i32, %c0_i32_0 : i32, i32, i32
  }
  func.func @transform_8(%arg0: i32, %arg1: i32) -> (i32, i32, i32) {
    %c0_i32 = arith.constant 0 : i32
    %c0_i32_0 = arith.constant 0 : i32
    %c0_i32_1 = arith.constant 0 : i32
    return %arg1, %c0_i32, %c0_i32_0 : i32, i32, i32
  }
  func.func @transform_9(%arg0: i32, %arg1: i32) -> (i32, i32, i32) {
    %c0_i32 = arith.constant 0 : i32
    %c0_i32_0 = arith.constant 0 : i32
    %c0_i32_1 = arith.constant 0 : i32
    return %arg1, %c0_i32, %c0_i32_0 : i32, i32, i32
  }
  func.func @transform_10(%arg0: i32, %arg1: i32) -> (i32, i32, i32) {
    %c0_i32 = arith.constant 0 : i32
    %c0_i32_0 = arith.constant 0 : i32
    %c0_i32_1 = arith.constant 0 : i32
    return %arg1, %c0_i32, %c0_i32_0 : i32, i32, i32
  }
  func.func @transform_11(%arg0: i32, %arg1: i32) -> (i32, i32, i32) {
    %c0_i32 = arith.constant 0 : i32
    %c0_i32_0 = arith.constant 0 : i32
    %c0_i32_1 = arith.constant 0 : i32
    return %arg1, %c0_i32, %c0_i32_0 : i32, i32, i32
  }
  func.func @transform_12(%arg0: i32, %arg1: i32) -> (i32, i32, i32) {
    %c0_i32 = arith.constant 0 : i32
    %c0_i32_0 = arith.constant 0 : i32
    %c0_i32_1 = arith.constant 0 : i32
    return %arg1, %c0_i32, %c0_i32_0 : i32, i32, i32
  }
  func.func @transform_13(%arg0: i32, %arg1: i32) -> (i32, i32, i32) {
    %c0_i32 = arith.constant 0 : i32
    %c0_i32_0 = arith.constant 0 : i32
    %c0_i32_1 = arith.constant 0 : i32
    return %arg1, %c0_i32, %c0_i32_0 : i32, i32, i32
  }
  func.func @transform_14(%arg0: i32, %arg1: i32) -> (i32, i32, i32) {
    %c0_i32 = arith.constant 0 : i32
    %c0_i32_0 = arith.constant 0 : i32
    %c0_i32_1 = arith.constant 0 : i32
    return %arg1, %c0_i32, %c0_i32_0 : i32, i32, i32
  }
  func.func @transform_15(%arg0: i32, %arg1: i32) -> (i32, i32) {
    %c0_i32 = arith.constant 0 : i32
    %c0_i32_0 = arith.constant 0 : i32
    return %arg0, %c0_i32 : i32, i32
  }
}

</mosaic_0001>

<bundles_post_ra>
// kernel: tpu_custom_call.1
= control target key start
LH: loop header
LB: loop body
LE: loop exit
PB: predicated region body
PF: predicated region fallthrough
CT: control target
= control target key end

     0   :  { %s2992_s0 = inlined_call_operand.vmem [shape: f32[32,32], index: 0, kind: input, shape index: {}]   ;;  %s2993_s1 = inlined_call_operand.vmem [shape: f32[2,16,16], index: 1, kind: input, shape index: {}]   ;;  %s2994_s2 = inlined_call_operand.vmem [shape: f32[64,32], index: 2, kind: input, shape index: {}]   ;;  %s2995_s3 = inlined_call_operand.vmem [shape: bf16[2,32,96], index: 3, kind: input, shape index: {}]   ;;  %s2996_s4 = inlined_call_operand.vmem [shape: f32[2,1,96], index: 4, kind: input, shape index: {}]   ;;  %s2997_s5 = inlined_call_operand.vmem [shape: bf16[2,32,32], index: 5, kind: input, shape index: {}]   ;;  %s2998_s6 = inlined_call_operand.vmem [shape: f32[2,1,32], index: 6, kind: input, shape index: {}]   ;;  %s2999_s7 = inlined_call_operand.vmem [shape: bf16[2,32,64], index: 7, kind: input, shape index: {}]   ;;  %s3000_s8 = inlined_call_operand.vmem [shape: f32[2,1,64], index: 8, kind: input, shape index: {}]   ;;  %s3001_s9 = inlined_call_operand.vmem [shape: bf16[2,64,32], index: 9, kind: input, shape index: {}]   ;;  %s3002_s10 = inlined_call_operand.vmem [shape: f32[2,1,32], index: 10, kind: input, shape index: {}]   ;;  %s3003_s11 = inlined_call_operand.vmem [shape: f32[2,1,32], index: 11, kind: input, shape index: {}]   ;;  %s3004_s12 = inlined_call_operand.vmem [shape: f32[2,1,32], index: 12, kind: input, shape index: {}]   ;;  %s3005_s13 = inlined_call_operand.vmem [shape: f32[2,1,32], index: 13, kind: input, shape index: {}]   ;;  %s3006_s14 = inlined_call_operand.vmem [shape: f32[2,1,32], index: 14, kind: input, shape index: {}]   ;;  %s3007_s15 = inlined_call_operand.hbm [shape: f32[32,32], index: 15, kind: output, shape index: {}]  }
   0x1   :  { %3013 = sst [smem:[#allocation8_spill]] %s2993_s1 }
   0x2   :  { %3014 = sst [smem:[#allocation9_spill]] %s2994_s2 }
   0x3   :  { %3015 = sst [smem:[#allocation10_spill]] %s2995_s3 }
   0x4   :  { %3016 = sst [smem:[#allocation11_spill]] %s2997_s5 }
   0x5   :  { %3017 = sst [smem:[#allocation12_spill]] %s2999_s7 }
   0x6   :  { %3018 = sst [smem:[#allocation13_spill]] %s3000_s8 }
   0x7   :  { %3019 = sst [smem:[#allocation14_spill]] %s3007_s15 }
   0x8   :  { %20 = vsyncpa [#allocation3], 0  ;;  %s2500_s18 = smov 0   ;;  %s2502_s19 = smov 0  }
   0x9   :  { %s2504_s20 = smov 0  }
   0xa LB: > { %3020 = sst [smem:[#allocation5_spill]] %s2409_s19  ;;  %s35_s22 = sadd.s32 1, %s2409_s19  ;;  %s2413_s20 = sphi %s2504_s20, %s26_s20   ;;  %s2409_s19 = sphi %s2502_s19, %s3040_s19   ;;  %s2405_s18 = sphi %s2500_s18, %s3039_s18  }
   0xb   : > { %3021 = sst [smem:[#allocation6_spill]] %s2413_s20  ;;  %p36_p0 = scmp.ge.s32.totalorder %s35_s22, 2 }
   0xc   : > { %p2050_p1 = scmp.ge.s32.totalorder %s2413_s20, 1  ;;  %p567_p2 = scmp.lt.s32.totalorder %s2413_s20, 3 }
   0xd   : > { %s3042_s22 = smov (%p36_p0, %s35_s22), 0 }
   0xe   : > { %3022 = sst [smem:[#allocation7_spill]] %s3042_s22  ;;  %p568_p3 = pnand %p2050_p1, %p567_p2 }
   0xf   : > { %p673_p4 = scmp.lt.s32.totalorder (!%p568_p3), %s2405_s18, 1  ;;  %s3023_s3 = sld [smem:[#allocation10_spill]] (!%p568_p3) }
  0x10   : > { %571 = sbr.rel (%p568_p3) target bundleno = 2099 (0x833), region = 80  ;;  %s3024_s5 = sld [smem:[#allocation11_spill]] (!%p568_p3) }
  0x11   : > { %s3025_s7 = sld [smem:[#allocation12_spill]] (!%p568_p3)  ;;  %p2059_p5 = scmp.ne.s32.totalorder (!%p568_p3), %s2405_s18, 0 }
  0x17   : > { %s2519_s23 = scalar_select %p673_p4, %s2405_s18, 1 }
  0x18   : > { %722 = sbr.rel (%p2059_p5) target bundleno = 31 (0x1f), region = 84  ;;  %v723_v0 = vld [vmem:[%s2992_s0] sm:$0xff] (!%p2059_p5)  ;;  %vm727_vm0 = vcmask (!%p2059_p5), 261120   ;;  %v724_v1 = vld [vmem:[%s2992_s0 + $0x8] sm:$0xff] (!%p2059_p5)  ;;  %v725_v2 = vld [vmem:[%s2992_s0 + $0x10] sm:$0xff] (!%p2059_p5) }
  0x19   : > { %s2108_s24 = sshll.u32 %s2519_s23, 4  ;;  %s2111_s28 = sshll.u32 %s2519_s23, 5  ;;  %728 = vst.msk [vmem:[#allocation2] sm:$0xff] (!%p2059_p5), %vm727_vm0, %v723_v0  ;;  %729 = vst.msk [vmem:[#allocation2 + $0x8] sm:$0xff] (!%p2059_p5), %vm727_vm0, %v724_v1  ;;  %v726_v3 = vld [vmem:[%s2992_s0 + $0x18] sm:$0xff] (!%p2059_p5) }
  0x1a   : > { %s677_s30 = scalar_lea.vmem %s3023_s3, %s2108_s24  ;;  %s2532_s21 = scalar_lea.vmem %s3024_s5, %s2108_s24  ;;  %730 = vst.msk [vmem:[#allocation2 + $0x10] sm:$0xff] (!%p2059_p5), %vm727_vm0, %v725_v2  ;;  %731 = vst.msk [vmem:[#allocation2 + $0x18] sm:$0xff] (!%p2059_p5), %vm727_vm0, %v726_v3 }
  0x1b   : > { %s2541_s2 = scalar_lea.vmem %s3025_s7, %s2108_s24  ;;  %s2551_s16 = scalar_lea.vmem %s3001_s9, %s2111_s28 }
  0x1c   : > { %s704_s19 = scalar_lea.vmem %s3002_s10, %s2519_s23  ;;  %s707_s1 = scalar_lea.vmem %s3003_s11, %s2519_s23 }
  0x1d   : > { %s710_s7 = scalar_lea.vmem %s3004_s12, %s2519_s23  ;;  %s713_s27 = scalar_lea.vmem %s3005_s13, %s2519_s23 }
  0x1e   : > { %s716_s28 = scalar_lea.vmem %s3006_s14, %s2519_s23 }
  0x1f PF: > { %v2263_v4 = vld [vmem:[%s677_s30] sm:$0xff]   ;;  %v2264_v5 = vld [vmem:[%s677_s30 + $0x8] sm:$0xff]   ;;  %vm761_vm1 = vcmask 261120   ;;  %s3027_s25 = scalar_lea.vmem %s2996_s4, %s2519_s23  ;;  %s3028_s5 = sld [smem:[#allocation9_spill]]  ;;  %vm919_vm2 = vcmask 130048   ;;  %vm1695_vm3 = vcmask 523264  }
  0x20   : > { %2150 = vmatprep.subr.bf16.mxu0 %v2263_v4  ;;  %v2585_v6 = vld [vmem:[#allocation2] sm:$0xff]  ;;  %v2587_v7 = vld [vmem:[#allocation2 + $0x8] sm:$0xff]  ;;  %s2415_s17 = smov 96   ;;  %s3029_s8 = sld [smem:[#allocation8_spill]] }
  0x21   : > { %v2589_v8 = vld [vmem:[#allocation2 + $0x10] sm:$0xff]  ;;  %2151 = vmatpush3.bf16.msra.mxu0 %v2263_v4  ;;  %v736_v9 = vpack.c.bf16 %v2587_v7, %v2585_v6  ;;  %v2593_v10 = vld [vmem:[#allocation2 + $0x18] sm:$0xff]  ;;  %v2060_v13 = vld [vmem:[%s3027_s25] ss:$0 sm:$0xff]  ;;  %s2416_s29 = smov 64   ;;  %s3031_s18 = sld [smem:[#allocation13_spill]] }
  0x22   : > { %2152 = vmatprep.subr.bf16.mxu0 %v2264_v5  ;;  %v737_v11 = vpack.c.bf16 %v2593_v10, %v2589_v8 }
  0x23   : > { %2154 = vmatprep.mubr.msk.bf16.mxu0 %vm761_vm1, %v736_v9 }
  0x25   : > { %2153 = vmatpush3.bf16.msra.mxu0 %v2264_v5  ;;  %v2607_v15 = vld [vmem:[%s3028_s5] sm:$0xff]  ;;  %v2612_v16 = vld [vmem:[%s3028_s5 + $0x8] sm:$0xff]  ;;  %v2627_v28 = vld [vmem:[%s3028_s5 + $0x10] sm:$0xff] }
  0x26   : > { %v825_v23 = vpack.c.bf16 %v2612_v16, %v2607_v15  ;;  %v2632_v29 = vld [vmem:[%s3028_s5 + $0x18] sm:$0xff]  ;;  %v2639_v31 = vld [vmem:[%s3028_s5 + $0x20] sm:$0xff]  ;;  %v2644_v32 = vld [vmem:[%s3028_s5 + $0x28] sm:$0xff] }
  0x27   : > { %v826_v33 = vpack.c.bf16 %v2632_v29, %v2627_v28  ;;  %v827_v35 = vpack.c.bf16 %v2644_v32, %v2639_v31  ;;  %v2656_v38 = vld [vmem:[%s3028_s5 + $0x30] sm:$0xff]  ;;  %v2661_v39 = vld [vmem:[%s3028_s5 + $0x38] sm:$0xff]  ;;  %v834_v47 = vld [vmem:[%s3029_s8] sm:$0xff]  ;;  %s3032_s30 = scalar_lea.vmem %s3031_s18, %s2519_s23 }
  0x28   : > { %2155 = vmatmul.mubr.msk.bf16.vlgmr.msra.gmra.mrb[0].mxu0 %vm761_vm1, %v737_v11  ;;  %v828_v41 = vpack.c.bf16 %v2661_v39, %v2656_v38  ;;  %v835_v51 = vld [vmem:[%s3029_s8 + $0x8] sm:$0xff]  ;;  %v2074_v5 = vld [vmem:[%s3029_s8 + $0x18] sm:$0xff] }
  0xfb   : > { %v2156_v12 = vpop.f32.mrb[0].mxu0 }
  0xfc   : > { %v802_v14 = vpop.f32.mrb[1].mxu0  ;;  %v811_v18 = vadd.f32 %v2156_v12, %v2060_v13 }
  0xfd   : > { %v2157_v17 = vpop.f32.mrb[2].mxu0  ;;  %v803_v21 = vadd.f32 %v2060_v13, %v802_v14 }
  0xfe   : > { %v814_v19 = vadd.f32 %v2157_v17, %v2060_v13  ;;  %v805_v20 = vpop.f32.mrb[3].mxu0 }
  0xff   : > { %v806_v22 = vadd.f32 %v2060_v13, %v805_v20 }
 0x100   : > { %v2616_v24 = vpack.c.bf16 %v814_v19, %v811_v18 }
 0x101   : > { %v2618_v25 = vpack.c.bf16 %v806_v22, %v803_v21  ;;  %v2073_v22 = vld [vmem:[%s3029_s8 + $0x10] sm:$0xff] }
 0x102   : > { %v1108_v43 = vmul.bf16 %v2616_v24, %v825_v23  ;;  %v1109_v44 = vmul.bf16 %v2616_v24, %v826_v33  ;;  %v1110_v45 = vmul.bf16 %v2616_v24, %v827_v35  ;;  %v1111_v46 = vmul.bf16 %v2616_v24, %v828_v41 }
 0x103   : > { %837 = vrot.lane.b32.xlu0 %v2618_v25, %s2415_s17  ;;  %v830_v26 = vmul.bf16 %v2618_v25, %v825_v23  ;;  %v831_v36 = vmul.bf16 %v2618_v25, %v826_v33  ;;  %v832_v37 = vmul.bf16 %v2618_v25, %v827_v35  ;;  %v833_v42 = vmul.bf16 %v2618_v25, %v828_v41 }
 0x105   : > { %2160 = vmatprep.mubr.msk.bf16.mxu1 %vm761_vm1, %v830_v26 }
 0x107   : > { %1116 = vrot.lane.b32.xlu0 %v2616_v24, %s2415_s17  ;;  %s3030_s17 = scalar_lea.vmem %s2998_s6, %s2519_s23 }
 0x175   : > { %v838_v27 = vpop.permute.xlu0 %837 }
 0x176   : > { %2226 = vmatprep.subr.msk.bf16.mxu1 %vm761_vm1, %v838_v27  ;;  %v852_v30 = vsel %vm761_vm1, %v838_v27, 0 }
 0x177   : > { %2159 = vmatpush3.bf16.xpose.msra.mxu1 %v852_v30 }
 0x179   : > { %v1117_v34 = vpop.permute.xlu0 %1116 }
 0x17a   : > { %2227 = vmatprep.subr.msk.bf16.mxu1 %vm761_vm1, %v1117_v34  ;;  %v1131_v40 = vsel %vm761_vm1, %v1117_v34, 0 }
 0x17e   : > { %2161 = vmatmul.mubr.msk.bf16.vlgmr.msra.gmra.mrb[0].mxu1 %vm761_vm1, %v831_v36 }
 0x17f   : > { %2164 = vmatprep.mubr.msk.bf16.mxu1 %vm761_vm1, %v832_v37  ;;  %2179 = vmatpush3.bf16.xpose.msra.mxu1 %v1131_v40 }
 0x186   : > { %2165 = vmatmul.mubr.msk.bf16.gmra.mrb[4].mxu1 %vm761_vm1, %v833_v42 }
 0x187   : > { %2180 = vmatprep.mubr.msk.bf16.mxu1 %vm761_vm1, %v1108_v43 }
 0x18e   : > { %2181 = vmatmul.mubr.msk.bf16.vlgmr.msra.gmra.mrb[8].mxu1 %vm761_vm1, %v1109_v44 }
 0x18f   : > { %2184 = vmatprep.mubr.msk.bf16.mxu1 %vm761_vm1, %v1110_v45 }
 0x196   : > { %2185 = vmatmul.mubr.msk.bf16.gmra.mrb[12].mxu1 %vm761_vm1, %v1111_v46 }
 0x251   : > { %v2162_v48 = vpop.f32.mrb[0].mxu1 }
 0x252   : > { %v2681_v49 = vadd.f32 %v2162_v48, %v834_v47  ;;  %v888_v50 = vpop.f32.mrb[1].mxu1 }
 0x253   : > { %v2686_v52 = vadd.f32 %v888_v50, %v834_v47  ;;  %v2163_v53 = vpop.f32.mrb[2].mxu1 }
 0x254   : > { %v891_v54 = vpop.f32.mrb[3].mxu1  ;;  %v926_v55 = vsel %vm919_vm2, %v2681_v49, -inf  ;;  %v2690_v56 = vadd.f32 %v2163_v53, %v835_v51 }
 0x255   : > { %927 = vmax.xlane.f32.xlu0 %v926_v55  ;;  %v920_v57 = vsel %vm919_vm2, %v2686_v52, -inf  ;;  %v2694_v58 = vadd.f32 %v891_v54, %v835_v51 }
 0x256   : > { %921 = vmax.xlane.f32.xlu1 %v920_v57  ;;  %v929_v60 = vsel %vm919_vm2, %v2690_v56, -inf }
 0x257   : > { %v923_v1 = vsel %vm919_vm2, %v2694_v58, -inf }
 0x259   : > { %v2166_v59 = vpop.f32.mrb[4].mxu1 }
 0x25a   : > { %v904_v61 = vpop.f32.mrb[5].mxu1  ;;  %930 = vmax.xlane.f32.xlu1 %v929_v60  ;;  %v2698_v0 = vadd.f32 %v2166_v59, %v834_v47 }
 0x25b   : > { %v2167_v62 = vpop.f32.mrb[6].mxu1  ;;  %v2702_v2 = vadd.f32 %v904_v61, %v834_v47 }
 0x25c   : > { %v907_v63 = vpop.f32.mrb[7].mxu1  ;;  %v938_v4 = vsel %vm919_vm2, %v2698_v0, -inf  ;;  %v2711_v14 = vadd.f32 %v2167_v62, %v835_v51 }
 0x25d   : > { %v932_v17 = vsel %vm919_vm2, %v2702_v2, -inf  ;;  %v2717_v19 = vadd.f32 %v907_v63, %v835_v51 }
 0x25e   : > { %924 = vmax.xlane.f32.xlu1 %v923_v1  ;;  %v941_v21 = vsel %vm919_vm2, %v2711_v14, -inf }
 0x25f   : > { %v935_v34 = vsel %vm919_vm2, %v2717_v19, -inf }
 0x261   : > { %v2182_v3 = vpop.f32.mrb[8].mxu1 }
 0x262   : > { %v1167_v9 = vpop.f32.mrb[9].mxu1  ;;  %939 = vmax.xlane.f32.xlu1 %v938_v4  ;;  %v2726_v33 = vadd.f32 %v2182_v3, %v2073_v22 }
 0x263   : > { %v2183_v11 = vpop.f32.mrb[10].mxu1  ;;  %v2734_v37 = vadd.f32 %v2073_v22, %v1167_v9 }
 0x264   : > { %v2709_v12 = vadd.f32 %v2183_v11, %v2074_v5  ;;  %v1170_v13 = vpop.f32.mrb[11].mxu1  ;;  %v1204_v40 = vsel %vm919_vm2, %v2726_v33, -inf }
 0x265   : > { %v2740_v42 = vadd.f32 %v2074_v5, %v1170_v13  ;;  %v1198_v43 = vsel %vm919_vm2, %v2734_v37, -inf }
 0x266   : > { %933 = vmax.xlane.f32.xlu1 %v932_v17  ;;  %v1207_v18 = vsel %vm919_vm2, %v2709_v12, -inf }
 0x267   : > { %1208 = vmax.xlane.f32.xlu0 %v1207_v18  ;;  %v1201_v45 = vsel %vm919_vm2, %v2740_v42, -inf }
 0x269   : > { %v2186_v20 = vpop.f32.mrb[12].mxu1 }
 0x26a   : > { %v1183_v23 = vpop.f32.mrb[13].mxu1  ;;  %942 = vmax.xlane.f32.xlu1 %v941_v21  ;;  %v2744_v44 = vadd.f32 %v2186_v20, %v2073_v22 }
 0x26b   : > { %v2187_v26 = vpop.f32.mrb[14].mxu1  ;;  %v2748_v46 = vadd.f32 %v2073_v22, %v1183_v23 }
 0x26c   : > { %v2724_v27 = vadd.f32 %v2187_v26, %v2074_v5  ;;  %v1186_v30 = vpop.f32.mrb[15].mxu1  ;;  %v1216_v47 = vsel %vm919_vm2, %v2744_v44, -inf }
 0x26d   : > { %v2730_v35 = vadd.f32 %v2074_v5, %v1186_v30  ;;  %v1210_v48 = vsel %vm919_vm2, %v2748_v46, -inf }
 0x26e   : > { %936 = vmax.xlane.f32.xlu1 %v935_v34  ;;  %v1219_v36 = vsel %vm919_vm2, %v2724_v27, -inf }
 0x26f   : > { %1220 = vmax.xlane.f32.xlu0 %v1219_v36  ;;  %v1213_v41 = vsel %vm919_vm2, %v2730_v35, -inf }
 0x272   : > { %1205 = vmax.xlane.f32.xlu1 %v1204_v40 }
 0x273   : > { %1214 = vmax.xlane.f32.xlu0 %v1213_v41 }
 0x276   : > { %1199 = vmax.xlane.f32.xlu1 %v1198_v43 }
 0x27a   : > { %1202 = vmax.xlane.f32.xlu1 %v1201_v45 }
 0x27e   : > { %1217 = vmax.xlane.f32.xlu1 %v1216_v47 }
 0x282   : > { %1211 = vmax.xlane.f32.xlu1 %v1210_v48 }
 0x289   : > { %1274 = vrot.lane.b32.xlu0 %v2616_v24, %s2416_s29 }
 0x293   : > { %996 = vrot.lane.b32.xlu1 %v2618_v25, %s2416_s29 }
 0x2e2   : > { %v928_v50 = vpop.xlane.xlu0 %927 }
 0x2e3   : > { %v946_v51 = vsub.f32 %v2681_v49, %v928_v50  ;;  %v922_v53 = vpop.xlane.xlu1 %921 }
 0x2e4   : > { %v944_v54 = vsub.f32 %v2686_v52, %v922_v53 }
 0x2e5   : > { %v956_v55 = vmul.f32 1.442695, %v946_v51 }
 0x2e6   : > { %v952_v57 = vmul.f32 1.442695, %v944_v54 }
 0x2e7   : > { %2273 = vpow2.f32 %v956_v55  ;;  %v931_v59 = vpop.xlane.xlu1 %930 }
 0x2e8   : > { %v947_v60 = vsub.f32 %v2690_v56, %v931_v59  ;;  %2275 = vpow2.f32 %v952_v57 }
 0x2ea   : > { %v958_v61 = vmul.f32 1.442695, %v947_v60 }
 0x2eb   : > { %v925_v62 = vpop.xlane.xlu1 %924 }
 0x2ec   : > { %2277 = vpow2.f32 %v958_v61  ;;  %v945_v24 = vsub.f32 %v2694_v58, %v925_v62 }
 0x2ee   : > { %v954_v63 = vmul.f32 1.442695, %v945_v24 }
 0x2ef   : > { %v940_v25 = vpop.xlane.xlu1 %939 }
 0x2f0   : > { %2279 = vpow2.f32 %v954_v63  ;;  %v950_v49 = vsub.f32 %v2698_v0, %v940_v25 }
 0x2f1   : > { %v2761_v1 = vpop.eup %2273 }
 0x2f2   : > { %v964_v52 = vmul.f32 1.442695, %v950_v49  ;;  %v974_v3 = vsel %vm919_vm2, %v2761_v1, 0.0  ;;  %v2276_v4 = vpop.eup %2275 }
 0x2f3   : > { %975 = vadd.xlane.f32.xlu1 %v974_v3  ;;  %v934_v56 = vpop.xlane.xlu1 %933  ;;  %v968_v11 = vsel %vm919_vm2, %v2276_v4, 0.0 }
 0x2f4   : > { %2281 = vpow2.f32 %v964_v52  ;;  %v948_v5 = vsub.f32 %v2702_v2, %v934_v56  ;;  %v1209_v13 = vpop.xlane.xlu0 %1208 }
 0x2f5   : > { %v1225_v21 = vsub.f32 %v2709_v12, %v1209_v13 }
 0x2f6   : > { %v2766_v9 = vpop.eup %2277  ;;  %v960_v58 = vmul.f32 1.442695, %v948_v5 }
 0x2f7   : > { %969 = vadd.xlane.f32.xlu1 %v968_v11  ;;  %v943_v0 = vpop.xlane.xlu1 %942  ;;  %v977_v17 = vsel %vm919_vm2, %v2766_v9, 0.0  ;;  %v1236_v40 = vmul.f32 1.442695, %v1225_v21 }
 0x2f8   : > { %2283 = vpow2.f32 %v960_v58  ;;  %v951_v18 = vsub.f32 %v2711_v14, %v943_v0  ;;  %978 = vadd.xlane.f32.xlu0 %v977_v17 }
 0x2fa   : > { %v2280_v20 = vpop.eup %2279  ;;  %v966_v22 = vmul.f32 1.442695, %v951_v18 }
 0x2fb   : > { %v937_v2 = vpop.xlane.xlu1 %936  ;;  %v971_v23 = vsel %vm919_vm2, %v2280_v20, 0.0  ;;  %v992_v26 = vpack.c.bf16 %v2280_v20, %v2276_v4 }
 0x2fc   : > { %2285 = vpow2.f32 %v966_v22  ;;  %v949_v30 = vsub.f32 %v2717_v19, %v937_v2  ;;  %972 = vadd.xlane.f32.xlu0 %v971_v23  ;;  %v1221_v34 = vpop.xlane.xlu0 %1220 }
 0x2fd   : > { %2170 = vmatprep.mubr.msk.bf16.mxu0 %vm919_vm2, %v992_v26  ;;  %v1229_v61 = vsub.f32 %v2724_v27, %v1221_v34 }
 0x2fe   : > { %v2776_v36 = vpop.eup %2281  ;;  %v962_v14 = vmul.f32 1.442695, %v949_v30 }
 0x2ff   : > { %v1206_v41 = vpop.xlane.xlu1 %1205  ;;  %v986_v12 = vsel %vm919_vm2, %v2776_v36, 0.0  ;;  %v1244_v49 = vmul.f32 1.442695, %v1229_v61 }
 0x300   : > { %2287 = vpow2.f32 %v962_v14  ;;  %v1224_v43 = vsub.f32 %v2726_v33, %v1206_v41  ;;  %987 = vadd.xlane.f32.xlu1 %v986_v12  ;;  %v1215_v19 = vpop.xlane.xlu0 %1214  ;;  %v2266_v12 = vld [vmem:[%s2532_s21 + $0x8] sm:$0xff]  }
 0x301   : > { %2289 = vpow2.f32 %v1236_v40  ;;  %v1227_v54 = vsub.f32 %v2730_v35, %v1215_v19 }
 0x302   : > { %v2284_v45 = vpop.eup %2283  ;;  %v1234_v47 = vmul.f32 1.442695, %v1224_v43 }
 0x303   : > { %v1200_v48 = vpop.xlane.xlu1 %1199  ;;  %v980_v50 = vsel %vm919_vm2, %v2284_v45, 0.0  ;;  %v1240_v62 = vmul.f32 1.442695, %v1227_v54 }
 0x304   : > { %2291 = vpow2.f32 %v1234_v47  ;;  %v1222_v51 = vsub.f32 %v2734_v37, %v1200_v48  ;;  %981 = vadd.xlane.f32.xlu1 %v980_v50 }
 0x306   : > { %v2286_v53 = vpop.eup %2285  ;;  %v1230_v55 = vmul.f32 1.442695, %v1222_v51 }
 0x307   : > { %v1203_v57 = vpop.xlane.xlu1 %1202  ;;  %v989_v59 = vsel %vm919_vm2, %v2286_v53, 0.0 }
 0x308   : > { %2293 = vpow2.f32 %v1230_v55  ;;  %v1223_v33 = vsub.f32 %v2740_v42, %v1203_v57  ;;  %990 = vadd.xlane.f32.xlu0 %v989_v59 }
 0x30a   : > { %v2288_v60 = vpop.eup %2287  ;;  %v1232_v24 = vmul.f32 1.442695, %v1223_v33 }
 0x30b   : > { %v1218_v63 = vpop.xlane.xlu1 %1217  ;;  %v983_v37 = vsel %vm919_vm2, %v2288_v60, 0.0  ;;  %v2290_v25 = vpop.eup %2289  ;;  %v994_v18 = vpack.c.bf16 %v2288_v60, %v2284_v45 }
 0x30c   : > { %2295 = vpow2.f32 %v1232_v24  ;;  %984 = vadd.xlane.f32.xlu0 %v983_v37  ;;  %v1228_v52 = vsub.f32 %v2744_v44, %v1218_v63  ;;  %v1255_v42 = vsel %vm919_vm2, %v2290_v25, 0.0  ;;  %v1275_v44 = vpop.permute.xlu0 %1274 }
 0x30d   : > { %2297 = vpow2.f32 %v1240_v62 }
 0x30e   : > { %v2292_v35 = vpop.eup %2291  ;;  %2299 = vpow2.f32 %v1244_v49  ;;  %v1242_v5 = vmul.f32 1.442695, %v1228_v52 }
 0x30f   : > { %v1212_v3 = vpop.xlane.xlu1 %1211  ;;  %v1252_v4 = vsel %vm919_vm2, %v2292_v35, 0.0  ;;  %v1271_v40 = vpack.c.bf16 %v2290_v25, %v2292_v35 }
 0x310   : > { %v1226_v27 = vsub.f32 %v2748_v46, %v1212_v3  ;;  %1256 = vadd.xlane.f32.xlu0 %v1255_v42  ;;  %1253 = vadd.xlane.f32.xlu1 %v1252_v4  ;;  %v993_v46 = vpack.c.bf16 %v2766_v9, %v2761_v1  ;;  %v995_v1 = vpack.c.bf16 %v2286_v53, %v2776_v36  ;;  %v2265_v36 = vld [vmem:[%s2532_s21] sm:$0xff]   ;;  %s3033_s21 = sld [smem:[#allocation6_spill]] }
 0x311   : > { %2198 = vmatprep.subr.bf16.mxu1 %v2265_v36 }
 0x312   : > { %v2294_v56 = vpop.eup %2293  ;;  %v1238_v58 = vmul.f32 1.442695, %v1226_v27  ;;  %2199 = vmatpush3.bf16.msra.mxu1 %v2265_v36 }
 0x313   : > { %v997_v11 = vpop.permute.xlu1 %996  ;;  %v1246_v13 = vsel %vm919_vm2, %v2294_v56, 0.0  ;;  %2200 = vmatprep.subr.bf16.mxu1 %v2266_v12 }
 0x314   : > { %2301 = vpow2.f32 %v1238_v58  ;;  %1247 = vadd.xlane.f32.xlu1 %v1246_v13  ;;  %2168 = vmatprep.subr.bf16.mxu0 %v997_v11 }
 0x315   : > { %2169 = vmatpush3.bf16.msra.mxu0 %v997_v11  ;;  %2303 = vpow2.f32 %v1242_v5 }
 0x316   : > { %v2296_v0 = vpop.eup %2295  ;;  %2188 = vmatprep.subr.bf16.mxu0 %v1275_v44  ;;  %2201 = vmatpush3.bf16.msra.mxu1 %v2266_v12 }
 0x317   : > { %v1249_v17 = vsel %vm919_vm2, %v2296_v0, 0.0  ;;  %v2298_v20 = vpop.eup %2297  ;;  %v1270_v30 = vpack.c.bf16 %v2296_v0, %v2294_v56 }
 0x318   : > { %1250 = vadd.xlane.f32.xlu0 %v1249_v17  ;;  %2171 = vmatmul.mubr.msk.bf16.vlgmr.msra.gmra.mrb[4].mxu0 %vm919_vm2, %v993_v46  ;;  %v1261_v21 = vsel %vm919_vm2, %v2298_v20, 0.0  ;;  %v2300_v22 = vpop.eup %2299 }
 0x319   : > { %2174 = vmatprep.mubr.msk.bf16.mxu0 %vm919_vm2, %v994_v18  ;;  %2189 = vmatpush3.bf16.msra.mxu0 %v1275_v44  ;;  %v1267_v23 = vsel %vm919_vm2, %v2300_v22, 0.0 }
 0x31c   : > { %1262 = vadd.xlane.f32.xlu0 %v1261_v21 }
 0x31e   : > { %v2302_v2 = vpop.eup %2301 }
 0x31f   : > { %v1258_v26 = vsel %vm919_vm2, %v2302_v2, 0.0  ;;  %v2304_v9 = vpop.eup %2303  ;;  %v1272_v14 = vpack.c.bf16 %v2298_v20, %v2302_v2 }
 0x320   : > { %1268 = vadd.xlane.f32.xlu0 %v1267_v23  ;;  %1259 = vadd.xlane.f32.xlu1 %v1258_v26  ;;  %v1264_v34 = vsel %vm919_vm2, %v2304_v9, 0.0  ;;  %v1273_v41 = vpack.c.bf16 %v2300_v22, %v2304_v9 }
 0x321   : > { %2175 = vmatmul.mubr.msk.bf16.gmra.mrb[8].mxu0 %vm919_vm2, %v995_v1 }
 0x322   : > { %2190 = vmatprep.mubr.msk.bf16.mxu0 %vm919_vm2, %v1270_v30 }
 0x324   : > { %1265 = vadd.xlane.f32.xlu1 %v1264_v34 }
 0x329   : > { %2191 = vmatmul.mubr.msk.bf16.vlgmr.msra.gmra.mrb[12].mxu0 %vm919_vm2, %v1271_v40 }
 0x32a   : > { %2194 = vmatprep.mubr.msk.bf16.mxu0 %vm919_vm2, %v1272_v14 }
 0x331   : > { %2195 = vmatmul.mubr.msk.bf16.gmra.mrb[16].mxu0 %vm919_vm2, %v1273_v41 }
 0x380   : > { %v976_v43 = vpop.xlane.xlu1 %975 }
 0x381   : > { %2305 = vrcp.f32 %v976_v43 }
 0x384   : > { %v970_v47 = vpop.xlane.xlu1 %969 }
 0x385   : > { %v979_v45 = vpop.xlane.xlu0 %978  ;;  %2307 = vrcp.f32 %v970_v47 }
 0x386   : > { %2309 = vrcp.f32 %v979_v45 }
 0x389   : > { %v973_v19 = vpop.xlane.xlu0 %972 }
 0x38a   : > { %2311 = vrcp.f32 %v973_v19 }
 0x38b   : > { %v2306_v57 = vpop.eup %2305 }
 0x38d   : > { %v988_v48 = vpop.xlane.xlu1 %987 }
 0x38e   : > { %2313 = vrcp.f32 %v988_v48 }
 0x38f   : > { %v2308_v33 = vpop.eup %2307 }
 0x390   : > { %v2310_v62 = vpop.eup %2309 }
 0x391   : > { %v982_v51 = vpop.xlane.xlu1 %981 }
 0x392   : > { %2315 = vrcp.f32 %v982_v51 }
 0x394   : > { %v2312_v25 = vpop.eup %2311 }
 0x395   : > { %v991_v50 = vpop.xlane.xlu0 %990 }
 0x396   : > { %2317 = vrcp.f32 %v991_v50 }
 0x398   : > { %v2314_v13 = vpop.eup %2313 }
 0x399   : > { %v985_v53 = vpop.xlane.xlu0 %984 }
 0x39a   : > { %2319 = vrcp.f32 %v985_v53 }
 0x39c   : > { %v2316_v46 = vpop.eup %2315 }
 0x39d   : > { %v1254_v54 = vpop.xlane.xlu1 %1253  ;;  %v1257_v55 = vpop.xlane.xlu0 %1256 }
 0x39e   : > { %2321 = vrcp.f32 %v1254_v54 }
 0x3a0   : > { %v2318_v18 = vpop.eup %2317 }
 0x3a1   : > { %v1248_v24 = vpop.xlane.xlu1 %1247 }
 0x3a2   : > { %2323 = vrcp.f32 %v1248_v24 }
 0x3a3   : > { %2325 = vrcp.f32 %v1257_v55 }
 0x3a4   : > { %v2320_v2 = vpop.eup %2319 }
 0x3a5   : > { %v1251_v35 = vpop.xlane.xlu0 %1250 }
 0x3a6   : > { %2327 = vrcp.f32 %v1251_v35 }
 0x3a8   : > { %v2322_v36 = vpop.eup %2321 }
 0x3a9   : > { %v1263_v44 = vpop.xlane.xlu0 %1262 }
 0x3ac   : > { %v2324_v19 = vpop.eup %2323 }
 0x3ad   : > { %v1260_v58 = vpop.xlane.xlu1 %1259  ;;  %v1269_v34 = vpop.xlane.xlu0 %1268 }
 0x3ae   : > { %2329 = vrcp.f32 %v1260_v58  ;;  %v2326_v51 = vpop.eup %2325 }
 0x3b1   : > { %v1266_v26 = vpop.xlane.xlu1 %1265 }
 0x3b2   : > { %2331 = vrcp.f32 %v1266_v26 }
 0x3b3   : > { %2333 = vrcp.f32 %v1263_v44 }
 0x3b4   : > { %2335 = vrcp.f32 %v1269_v34 }
 0x3eb   : > { %v2172_v59 = vpop.f32.mrb[4].mxu0 }
 0x3ec   : > { %v1086_v60 = vmul.f32 %v2306_v57, %v2172_v59  ;;  %v1045_v61 = vpop.f32.mrb[5].mxu0  ;;  %v2328_v57 = vpop.eup %2327 }
 0x3ed   : > { %v1084_v63 = vmul.f32 %v2308_v33, %v1045_v61  ;;  %v2173_v37 = vpop.f32.mrb[6].mxu0  ;;  %v2330_v35 = vpop.eup %2329 }
 0x3ee   : > { %v1094_v49 = vmul.f32 %v1086_v60, %v2627_v28  ;;  %v1087_v52 = vmul.f32 %v2310_v62, %v2173_v37  ;;  %v1048_v3 = vpop.f32.mrb[7].mxu0 }
 0x3ef   : > { %v1092_v42 = vmul.f32 %v1084_v63, %v2607_v15  ;;  %v1085_v4 = vmul.f32 %v2312_v25, %v1048_v3  ;;  %v2332_v3 = vpop.eup %2331 }
 0x3f0   : > { %v1095_v27 = vmul.f32 %v1087_v52, %v2632_v29 }
 0x3f1   : > { %v1100_v56 = vadd.f32 %v1094_v49, %v1092_v42  ;;  %v1093_v5 = vmul.f32 %v1085_v4, %v2612_v16  ;;  %v2334_v4 = vpop.eup %2333 }
 0x3f3   : > { %v1101_v11 = vadd.f32 %v1095_v27, %v1093_v5 }
 0x3f4   : > { %v2176_v0 = vpop.f32.mrb[8].mxu0 }
 0x3f5   : > { %v1061_v17 = vpop.f32.mrb[9].mxu0  ;;  %v1090_v20 = vmul.f32 %v2314_v13, %v2176_v0 }
 0x3f6   : > { %v1088_v21 = vmul.f32 %v2316_v46, %v1061_v17  ;;  %v2177_v22 = vpop.f32.mrb[10].mxu0 }
 0x3f7   : > { %v1064_v23 = vpop.f32.mrb[11].mxu0  ;;  %v1091_v9 = vmul.f32 %v2318_v18, %v2177_v22  ;;  %v1098_v40 = vmul.f32 %v1090_v20, %v2656_v38 }
 0x3f8   : > { %v1096_v1 = vmul.f32 %v1088_v21, %v2639_v31  ;;  %v1089_v30 = vmul.f32 %v2320_v2, %v1064_v23 }
 0x3f9   : > { %v1099_v43 = vmul.f32 %v1091_v9, %v2661_v39 }
 0x3fa   : > { %v1102_v14 = vadd.f32 %v1100_v56, %v1096_v1  ;;  %v1097_v41 = vmul.f32 %v1089_v30, %v2644_v32 }
 0x3fc   : > { %v1104_v12 = vadd.f32 %v1102_v14, %v1098_v40  ;;  %v1103_v45 = vadd.f32 %v1101_v11, %v1097_v41  ;;  %v2192_v47 = vpop.f32.mrb[12].mxu0 }
 0x3fd   : > { %v1364_v48 = vmul.f32 %v2322_v36, %v2192_v47  ;;  %v1323_v50 = vpop.f32.mrb[13].mxu0 }
 0x3fe   : > { %v1105_v53 = vadd.f32 %v1103_v45, %v1099_v43  ;;  %v1362_v54 = vmul.f32 %v2324_v19, %v1323_v50  ;;  %v2193_v55 = vpop.f32.mrb[14].mxu0  ;;  %v2267_v19 = vld [vmem:[%s2541_s2] sm:$0xff]  }
 0x3ff   : > { %v1372_v59 = vmul.f32 %v1364_v48, %v2627_v28  ;;  %v1365_v33 = vmul.f32 %v2326_v51, %v2193_v55  ;;  %v1326_v60 = vpop.f32.mrb[15].mxu0  ;;  %2206 = vmatprep.subr.bf16.mxu0 %v2267_v19  ;;  %v2268_v48 = vld [vmem:[%s2541_s2 + $0x8] sm:$0xff]  }
 0x400   : > { %v1370_v61 = vmul.f32 %v1362_v54, %v2607_v15  ;;  %v1363_v62 = vmul.f32 %v2328_v57, %v1326_v60  ;;  %v1106_v24 = vpack.c.bf16 %v1105_v53, %v1104_v12  ;;  %v2336_v15 = vpop.eup %2335  ;;  %2207 = vmatpush3.bf16.msra.mxu0 %v2267_v19 }
 0x401   : > { %v1373_v63 = vmul.f32 %v1365_v33, %v2632_v29  ;;  %2208 = vmatprep.subr.bf16.mxu0 %v2268_v48 }
 0x402   : > { %v1378_v37 = vadd.f32 %v1372_v59, %v1370_v61  ;;  %v1371_v25 = vmul.f32 %v1363_v62, %v2612_v16  ;;  %2202 = vmatprep.mubr.msk.bf16.mxu1 %vm761_vm1, %v1106_v24 }
 0x404   : > { %v1379_v49 = vadd.f32 %v1373_v63, %v1371_v25  ;;  %v2196_v52 = vpop.f32.mrb[16].mxu0  ;;  %2209 = vmatpush3.bf16.msra.mxu0 %v2268_v48 }
 0x405   : > { %v1339_v42 = vpop.f32.mrb[17].mxu0  ;;  %v1368_v28 = vmul.f32 %v2332_v3, %v2196_v52 }
 0x406   : > { %v1366_v27 = vmul.f32 %v2330_v35, %v1339_v42  ;;  %v2197_v56 = vpop.f32.mrb[18].mxu0 }
 0x407   : > { %v1342_v5 = vpop.f32.mrb[19].mxu0  ;;  %v1369_v29 = vmul.f32 %v2336_v15, %v2197_v56  ;;  %v1376_v16 = vmul.f32 %v1368_v28, %v2656_v38 }
 0x408   : > { %v1374_v58 = vmul.f32 %v1366_v27, %v2639_v31  ;;  %v1367_v11 = vmul.f32 %v2334_v4, %v1342_v5  ;;  %v2083_v31 = vld [vmem:[%s3030_s17] ss:$0 sm:$0xff] }
 0x409   : > { %v1377_v46 = vmul.f32 %v1369_v29, %v2661_v39 }
 0x40a   : > { %v1380_v13 = vadd.f32 %v1378_v37, %v1374_v58  ;;  %v1375_v44 = vmul.f32 %v1367_v11, %v2644_v32 }
 0x40c   : > { %v1382_v0 = vadd.f32 %v1380_v13, %v1376_v16  ;;  %v1381_v17 = vadd.f32 %v1379_v49, %v1375_v44 }
 0x40e   : > { %v1383_v18 = vadd.f32 %v1381_v17, %v1377_v46  ;;  %v2088_v17 = vld [vmem:[%s707_s1] ss:$0 sm:$0xff] }
 0x410   : > { %v1384_v20 = vpack.c.bf16 %v1383_v18, %v1382_v0 }
 0x412   : > { %2203 = vmatmul.mubr.msk.bf16.vlgmr.msra.gmra.mrb[16].mxu1 %vm761_vm1, %v1384_v20 }
 0x4e5   : > { %v2204_v21 = vpop.f32.mrb[16].mxu1 }
 0x4e6   : > { %v1457_v22 = vadd.f32 %v2204_v21, %v2083_v31  ;;  %v1448_v2 = vpop.f32.mrb[17].mxu1 }
 0x4e7   : > { %v1449_v38 = vadd.f32 %v2083_v31, %v1448_v2  ;;  %v2205_v23 = vpop.f32.mrb[18].mxu1 }
 0x4e8   : > { %v2834_v32 = vadd.f32 %v1457_v22, %v2589_v8  ;;  %v1460_v26 = vadd.f32 %v2205_v23, %v2083_v31  ;;  %v1451_v39 = vpop.f32.mrb[19].mxu1  ;;  %v2089_v23 = vld [vmem:[%s710_s7] ss:$0 sm:$0xff] }
 0x4e9   : > { %v1452_v1 = vadd.f32 %v2083_v31, %v1451_v39  ;;  %v2837_v9 = vadd.f32 %v1449_v38, %v2585_v6 }
 0x4ea   : > { %v2840_v30 = vadd.f32 %v1460_v26, %v2593_v10  ;;  %v1473_v34 = vsel %vm761_vm1, %v2834_v32, 0.0  ;;  %v1486_v36 = vmul.f32 %v2834_v32, %v2834_v32 }
 0x4eb   : > { %1474 = vadd.xlane.f32.xlu1 %v1473_v34  ;;  %v2845_v40 = vadd.f32 %v1452_v1, %v2587_v7  ;;  %v1467_v14 = vsel %vm761_vm1, %v2837_v9, 0.0  ;;  %v1484_v6 = vmul.f32 %v2837_v9, %v2837_v9 }
 0x4ec   : > { %v1476_v8 = vsel %vm761_vm1, %v2840_v30, 0.0  ;;  %v1487_v43 = vmul.f32 %v2840_v30, %v2840_v30  ;;  %v1494_v45 = vsel %vm761_vm1, %v1486_v36, 0.0  ;;  %v2270_v36 = vld [vmem:[%s2551_s16 + $0x8] sm:$0xff]  }
 0x4ed   : > { %1477 = vadd.xlane.f32.xlu0 %v1476_v8  ;;  %v1470_v10 = vsel %vm761_vm1, %v2845_v40, 0.0  ;;  %v1485_v7 = vmul.f32 %v2845_v40, %v2845_v40  ;;  %v1488_v41 = vsel %vm761_vm1, %v1484_v6, 0.0 }
 0x4ee   : > { %v1497_v47 = vsel %vm761_vm1, %v1487_v43, 0.0  ;;  %v2272_v43 = vld [vmem:[%s2551_s16 + $0x18] sm:$0xff]  }
 0x4ef   : > { %1468 = vadd.xlane.f32.xlu1 %v1467_v14  ;;  %v1491_v12 = vsel %vm761_vm1, %v1485_v7, 0.0 }
 0x4f1   : > { %1471 = vadd.xlane.f32.xlu0 %v1470_v10 }
 0x4f3   : > { %1489 = vadd.xlane.f32.xlu1 %v1488_v41  ;;  %v2269_v41 = vld [vmem:[%s2551_s16] sm:$0xff]  }
 0x4f4   : > { %2214 = vmatprep.subr.bf16.mxu1 %v2269_v41 }
 0x4f5   : > { %1492 = vadd.xlane.f32.xlu0 %v1491_v12  ;;  %2215 = vmatpush3.bf16.msra.mxu1 %v2269_v41  ;;  %v2271_v12 = vld [vmem:[%s2551_s16 + $0x10] sm:$0xff]  }
 0x4f6   : > { %2216 = vmatprep.subr.bf16.mxu1 %v2270_v36 }
 0x4f7   : > { %1495 = vadd.xlane.f32.xlu1 %v1494_v45  ;;  %v2090_v45 = vld [vmem:[%s3032_s30] ss:$0 sm:$0xff] }
 0x4f9   : > { %1498 = vadd.xlane.f32.xlu0 %v1497_v47  ;;  %2217 = vmatpush3.bf16.msra.mxu1 %v2270_v36 }
 0x4fa   : > { %2218 = vmatprep.subr.bf16.mxu1 %v2271_v12 }
 0x4fd   : > { %2219 = vmatpush3.bf16.msra.mxu1 %v2271_v12 }
 0x4fe   : > { %2220 = vmatprep.subr.bf16.mxu1 %v2272_v43 }
 0x501   : > { %2221 = vmatpush3.bf16.msra.mxu1 %v2272_v43 }
 0x578   : > { %v1475_v50 = vpop.xlane.xlu1 %1474 }
 0x579   : > { %v1482_v33 = vmul.f32 0.03125, %v1475_v50 }
 0x57a   : > { %v1478_v51 = vpop.xlane.xlu0 %1477 }
 0x57b   : > { %v1483_v62 = vmul.f32 0.03125, %v1478_v51  ;;  %v1506_v49 = vmul.f32 %v1482_v33, %v1482_v33  ;;  %v1518_v21 = vsub.f32 %v2834_v32, %v1482_v33 }
 0x57c   : > { %v1469_v53 = vpop.xlane.xlu1 %1468 }
 0x57d   : > { %v1480_v54 = vmul.f32 0.03125, %v1469_v53  ;;  %v1507_v4 = vmul.f32 %v1483_v62, %v1483_v62  ;;  %v1519_v26 = vsub.f32 %v2840_v30, %v1483_v62 }
 0x57e   : > { %v1472_v55 = vpop.xlane.xlu0 %1471 }
 0x57f   : > { %v1481_v57 = vmul.f32 0.03125, %v1472_v55  ;;  %v1504_v60 = vmul.f32 %v1480_v54, %v1480_v54  ;;  %v1516_v0 = vsub.f32 %v2837_v9, %v1480_v54 }
 0x580   : > { %v1490_v59 = vpop.xlane.xlu1 %1489 }
 0x581   : > { %v1500_v61 = vmul.f32 0.03125, %v1490_v59  ;;  %v1505_v63 = vmul.f32 %v1481_v57, %v1481_v57  ;;  %v1517_v18 = vsub.f32 %v2845_v40, %v1481_v57 }
 0x582   : > { %v1493_v24 = vpop.xlane.xlu0 %1492 }
 0x583   : > { %v1508_v37 = vsub.f32 %v1500_v61, %v1504_v60  ;;  %v1501_v25 = vmul.f32 0.03125, %v1493_v24 }
 0x584   : > { %v1496_v35 = vpop.xlane.xlu1 %1495 }
 0x585   : > { %v1512_v52 = vmax.f32 %v1508_v37, 0.0  ;;  %v1509_v3 = vsub.f32 %v1501_v25, %v1505_v63  ;;  %v1502_v42 = vmul.f32 0.03125, %v1496_v35 }
 0x586   : > { %v1499_v28 = vpop.xlane.xlu0 %1498 }
 0x587   : > { %v1520_v27 = vadd.f32 1e-05, %v1512_v52  ;;  %v1513_v56 = vmax.f32 %v1509_v3, 0.0  ;;  %v1510_v15 = vsub.f32 %v1502_v42, %v1506_v49  ;;  %v1503_v5 = vmul.f32 0.03125, %v1499_v28 }
 0x589   : > { %2337 = vrsqrt.f32 %v1520_v27  ;;  %v1521_v58 = vadd.f32 1e-05, %v1513_v56  ;;  %v1514_v29 = vmax.f32 %v1510_v15, 0.0  ;;  %v1511_v11 = vsub.f32 %v1503_v5, %v1507_v4 }
 0x58b   : > { %2339 = vrsqrt.f32 %v1521_v58  ;;  %v1522_v16 = vadd.f32 1e-05, %v1514_v29  ;;  %v1515_v13 = vmax.f32 %v1511_v11, 0.0  ;;  %v2095_v29 = vld [vmem:[%s704_s19] ss:$0 sm:$0xff] }
 0x58d   : > { %2341 = vrsqrt.f32 %v1522_v16  ;;  %v1523_v44 = vadd.f32 1e-05, %v1515_v13 }
 0x58f   : > { %2343 = vrsqrt.f32 %v1523_v44 }
 0x593   : > { %v2338_v46 = vpop.eup %2337 }
 0x594   : > { %v1528_v20 = vmul.f32 %v2338_v46, %v1516_v0 }
 0x595   : > { %v2340_v31 = vpop.eup %2339 }
 0x596   : > { %v1529_v22 = vmul.f32 %v2340_v31, %v1517_v18  ;;  %v1539_v2 = vmul.f32 %v2088_v17, %v1528_v20 }
 0x597   : > { %v2342_v38 = vpop.eup %2341 }
 0x598   : > { %v1530_v39 = vmul.f32 %v2342_v38, %v1518_v21  ;;  %v1540_v1 = vmul.f32 %v2088_v17, %v1529_v22  ;;  %v2881_v8 = vadd.f32 %v2089_v23, %v1539_v2 }
 0x599   : > { %v2344_v9 = vpop.eup %2343 }
 0x59a   : > { %v1531_v34 = vmul.f32 %v2344_v9, %v1519_v26  ;;  %v1541_v40 = vmul.f32 %v2088_v17, %v1530_v39  ;;  %v2883_v32 = vadd.f32 %v2089_v23, %v1540_v1 }
 0x59c   : > { %v1542_v14 = vmul.f32 %v2088_v17, %v1531_v34  ;;  %v1554_v6 = vpack.c.bf16 %v2883_v32, %v2881_v8  ;;  %v1552_v10 = vadd.f32 %v2089_v23, %v1541_v40 }
 0x59e   : > { %v2887_v7 = vadd.f32 %v2089_v23, %v1542_v14  ;;  %2210 = vmatprep.mubr.msk.bf16.mxu0 %vm761_vm1, %v1554_v6 }
 0x5a0   : > { %v1555_v30 = vpack.c.bf16 %v2887_v7, %v1552_v10 }
 0x5a2   : > { %2211 = vmatmul.mubr.msk.bf16.vlgmr.msra.gmra.mrb[20].mxu0 %vm761_vm1, %v1555_v30 }
 0x675   : > { %v2212_v47 = vpop.f32.mrb[20].mxu0 }
 0x676   : > { %v1628_v19 = vadd.f32 %v2212_v47, %v2090_v45  ;;  %v1619_v48 = vpop.f32.mrb[21].mxu0 }
 0x677   : > { %v1620_v50 = vadd.f32 %v2090_v45, %v1619_v48  ;;  %v2213_v51 = vpop.f32.mrb[22].mxu0 }
 0x678   : > { %v1640_v53 = vmul.f32 0.70710677, %v1628_v19  ;;  %v1631_v54 = vadd.f32 %v2213_v51, %v2090_v45  ;;  %v1622_v55 = vpop.f32.mrb[23].mxu0  ;;  %v1636_v35 = vmul.f32 0.5, %v1628_v19 }
 0x679   : > { %v1638_v57 = vmul.f32 0.70710677, %v1620_v50  ;;  %v1623_v59 = vadd.f32 %v2090_v45, %v1622_v55  ;;  %v1634_v3 = vmul.f32 0.5, %v1620_v50 }
 0x67a   : > { %2345 = verf.f32 %v1640_v53  ;;  %v1641_v33 = vmul.f32 0.70710677, %v1631_v54  ;;  %v1637_v49 = vmul.f32 0.5, %v1631_v54 }
 0x67b   : > { %2347 = verf.f32 %v1638_v57  ;;  %v1639_v60 = vmul.f32 0.70710677, %v1623_v59  ;;  %v1635_v42 = vmul.f32 0.5, %v1623_v59 }
 0x67c   : > { %2349 = verf.f32 %v1641_v33 }
 0x67d   : > { %2351 = verf.f32 %v1639_v60 }
 0x684   : > { %v2346_v61 = vpop.eup %2345 }
 0x685   : > { %v2348_v62 = vpop.eup %2347  ;;  %v1648_v24 = vadd.f32 1.0, %v2346_v61 }
 0x686   : > { %v2350_v63 = vpop.eup %2349  ;;  %v1646_v37 = vadd.f32 1.0, %v2348_v62 }
 0x687   : > { %v2352_v25 = vpop.eup %2351  ;;  %v1649_v52 = vadd.f32 1.0, %v2350_v63  ;;  %v1652_v28 = vmul.f32 %v1648_v24, %v1636_v35 }
 0x688   : > { %v1647_v4 = vadd.f32 1.0, %v2352_v25  ;;  %v1650_v56 = vmul.f32 %v1646_v37, %v1634_v3 }
 0x689   : > { %v1653_v27 = vmul.f32 %v1649_v52, %v1637_v49 }
 0x68a   : > { %v1651_v15 = vmul.f32 %v1647_v4, %v1635_v42 }
 0x68b   : > { %v1655_v5 = vpack.c.bf16 %v1653_v27, %v1652_v28  ;;  %v2102_v27 = vld [vmem:[%s713_s27] ss:$0 sm:$0xff]  ;;  %s2417_s27 = smov [#allocation2]  }
 0x68c   : > { %v1654_v58 = vpack.c.bf16 %v1651_v15, %v1650_v56  ;;  %s1854_s23 = sshll.u32 %s2417_s27, 4  ;;  %s1855_s23 = int_to_ptr.vmem [resolvable:$true] %s1854_s23 }
 0x68d   : > { %s2361_s17 = scalar_lea.vmem %s1855_s23, 512  ;;  %p2368_p10 = scmp.lt.s32.totalorder %s1855_s23, %s1855_s23 }
 0x68e   : > { %2222 = vmatprep.mubr.msk.bf16.mxu1 %vm1695_vm3, %v1654_v58  ;;  %v2103_v58 = vld [vmem:[%s716_s28] ss:$0 sm:$0xff]  ;;  %s3034_s28 = sadd.s32 4294967295, %s3033_s21   ;;  %p2362_p7 = scmp.ne.s32.totalorder %s1855_s23, %s2361_s17 }
 0x68f   : > { %2223 = vmatmul.mubr.msk.bf16.vlgmr.msra.gmra.mrb[20].mxu1 %vm1695_vm3, %v1655_v5  ;;  %p2955_p6 = scmp.eq.s32.totalorder %s3034_s28, 1  ;;  %p2369_p11 = scmp.lt.s32.totalorder %s2361_s17, %s2361_s17 }
 0x691   : > { %p2363_p8 = pnand %p2362_p7, %p2955_p6  ;;  %p2370_p12 = por %p2369_p11, %p2368_p10 }
 0x693   : > { %p2364_p9 = pneg %p2363_p8 }
 0x695   : > { %p2371_p13 = pnand %p2370_p12, %p2364_p9 }
 0x762   : > { %v2224_v11 = vpop.f32.mrb[20].mxu1 }
 0x763   : > { %v1745_v16 = vadd.f32 %v2224_v11, %v2095_v29  ;;  %v1736_v13 = vpop.f32.mrb[21].mxu1 }
 0x764   : > { %v1737_v44 = vadd.f32 %v2095_v29, %v1736_v13  ;;  %v2225_v0 = vpop.f32.mrb[22].mxu1 }
 0x765   : > { %v2906_v46 = vadd.f32 %v1745_v16, %v1552_v10  ;;  %v1748_v17 = vadd.f32 %v2225_v0, %v2095_v29  ;;  %v1739_v18 = vpop.f32.mrb[23].mxu1 }
 0x766   : > { %v1740_v20 = vadd.f32 %v2095_v29, %v1739_v18  ;;  %v2909_v31 = vadd.f32 %v1737_v44, %v2881_v8 }
 0x767   : > { %v2912_v21 = vadd.f32 %v1748_v17, %v2887_v7  ;;  %v1761_v22 = vsel %vm761_vm1, %v2906_v46, 0.0  ;;  %v1773_v34 = vmul.f32 %v2906_v46, %v2906_v46 }
 0x768   : > { %1762 = vadd.xlane.f32.xlu1 %v1761_v22  ;;  %v2917_v2 = vadd.f32 %v1740_v20, %v2883_v32  ;;  %v1755_v23 = vsel %vm761_vm1, %v2909_v31, 0.0  ;;  %v1771_v26 = vmul.f32 %v2909_v31, %v2909_v31 }
 0x769   : > { %v1764_v38 = vsel %vm761_vm1, %v2912_v21, 0.0  ;;  %v1774_v8 = vmul.f32 %v2912_v21, %v2912_v21  ;;  %v1781_v32 = vsel %vm761_vm1, %v1773_v34, 0.0 }
 0x76a   : > { %1765 = vadd.xlane.f32.xlu0 %v1764_v38  ;;  %v1758_v39 = vsel %vm761_vm1, %v2917_v2, 0.0  ;;  %v1772_v1 = vmul.f32 %v2917_v2, %v2917_v2  ;;  %v1775_v9 = vsel %vm761_vm1, %v1771_v26, 0.0 }
 0x76b   : > { %v1784_v14 = vsel %vm761_vm1, %v1774_v8, 0.0 }
 0x76c   : > { %1756 = vadd.xlane.f32.xlu1 %v1755_v23  ;;  %v1778_v40 = vsel %vm761_vm1, %v1772_v1, 0.0 }
 0x76e   : > { %1759 = vadd.xlane.f32.xlu0 %v1758_v39 }
 0x770   : > { %1776 = vadd.xlane.f32.xlu1 %v1775_v9 }
 0x772   : > { %1779 = vadd.xlane.f32.xlu0 %v1778_v40 }
 0x774   : > { %1782 = vadd.xlane.f32.xlu1 %v1781_v32 }
 0x776   : > { %1785 = vadd.xlane.f32.xlu0 %v1784_v14 }
 0x7f5   : > { %v1763_v6 = vpop.xlane.xlu1 %1762 }
 0x7f6   : > { %v1769_v43 = vmul.f32 0.03125, %v1763_v6 }
 0x7f7   : > { %v1766_v10 = vpop.xlane.xlu0 %1765 }
 0x7f8   : > { %v1770_v19 = vmul.f32 0.03125, %v1766_v10  ;;  %v1793_v55 = vmul.f32 %v1769_v43, %v1769_v43  ;;  %v1805_v29 = vsub.f32 %v2906_v46, %v1769_v43 }
 0x7f9   : > { %v1757_v7 = vpop.xlane.xlu1 %1756 }
 0x7fa   : > { %v1767_v30 = vmul.f32 0.03125, %v1757_v7  ;;  %v1794_v60 = vmul.f32 %v1770_v19, %v1770_v19  ;;  %v1806_v44 = vsub.f32 %v2912_v21, %v1770_v19 }
 0x7fb   : > { %v1760_v41 = vpop.xlane.xlu0 %1759 }
 0x7fc   : > { %v1768_v36 = vmul.f32 0.03125, %v1760_v41  ;;  %v1791_v45 = vmul.f32 %v1767_v30, %v1767_v30  ;;  %v1803_v4 = vsub.f32 %v2909_v31, %v1767_v30 }
 0x7fd   : > { %v1777_v12 = vpop.xlane.xlu1 %1776 }
 0x7fe   : > { %v1787_v47 = vmul.f32 0.03125, %v1777_v12  ;;  %v1792_v50 = vmul.f32 %v1768_v36, %v1768_v36  ;;  %v1804_v56 = vsub.f32 %v2917_v2, %v1768_v36 }
 0x7ff   : > { %v1780_v48 = vpop.xlane.xlu0 %1779 }
 0x800   : > { %v1795_v51 = vsub.f32 %v1787_v47, %v1791_v45  ;;  %v1788_v53 = vmul.f32 0.03125, %v1780_v48 }
 0x801   : > { %v1783_v54 = vpop.xlane.xlu1 %1782 }
 0x802   : > { %v1799_v57 = vmax.f32 %v1795_v51, 0.0  ;;  %v1796_v59 = vsub.f32 %v1788_v53, %v1792_v50  ;;  %v1789_v33 = vmul.f32 0.03125, %v1783_v54 }
 0x803   : > { %v1786_v61 = vpop.xlane.xlu0 %1785 }
 0x804   : > { %v1807_v62 = vadd.f32 1e-05, %v1799_v57  ;;  %v1800_v24 = vmax.f32 %v1796_v59, 0.0  ;;  %v1797_v63 = vsub.f32 %v1789_v33, %v1793_v55  ;;  %v1790_v37 = vmul.f32 0.03125, %v1786_v61 }
 0x806   : > { %2353 = vrsqrt.f32 %v1807_v62  ;;  %v1808_v25 = vadd.f32 1e-05, %v1800_v24  ;;  %v1801_v35 = vmax.f32 %v1797_v63, 0.0  ;;  %v1798_v49 = vsub.f32 %v1790_v37, %v1794_v60 }
 0x808   : > { %2355 = vrsqrt.f32 %v1808_v25  ;;  %v1809_v52 = vadd.f32 1e-05, %v1801_v35  ;;  %v1802_v3 = vmax.f32 %v1798_v49, 0.0 }
 0x80a   : > { %2357 = vrsqrt.f32 %v1809_v52  ;;  %v1810_v42 = vadd.f32 1e-05, %v1802_v3 }
 0x80c   : > { %2359 = vrsqrt.f32 %v1810_v42 }
 0x810   : > { %v2354_v28 = vpop.eup %2353 }
 0x811   : > { %v1815_v15 = vmul.f32 %v2354_v28, %v1803_v4 }
 0x812   : > { %v2356_v5 = vpop.eup %2355 }
 0x813   : > { %v1826_v11 = vmul.f32 %v2102_v27, %v1815_v15  ;;  %v1816_v16 = vmul.f32 %v2356_v5, %v1804_v56 }
 0x814   : > { %v2358_v13 = vpop.eup %2357 }
 0x815   : > { %v1837_v0 = vadd.f32 %v2103_v58, %v1826_v11  ;;  %v1827_v17 = vmul.f32 %v2102_v27, %v1816_v16  ;;  %v1817_v18 = vmul.f32 %v2358_v13, %v1805_v29 }
 0x816   : > { %v2360_v20 = vpop.eup %2359 }
 0x817   : > { %1841 = vst.msk [vmem:[#allocation2] sm:$0xff] %vm761_vm1, %v1837_v0  ;;  %v1838_v31 = vadd.f32 %v2103_v58, %v1827_v17  ;;  %v1828_v22 = vmul.f32 %v2102_v27, %v1817_v18  ;;  %v1818_v2 = vmul.f32 %v2360_v20, %v1806_v44 }
 0x819   : > { %1842 = vst.msk [vmem:[#allocation2 + $0x8] sm:$0xff] %vm761_vm1, %v1838_v31  ;;  %v1839_v46 = vadd.f32 %v2103_v58, %v1828_v22  ;;  %v1829_v38 = vmul.f32 %v2102_v27, %v1818_v2 }
 0x81b   : > { %1843 = vst.msk [vmem:[#allocation2 + $0x10] sm:$0xff] %vm761_vm1, %v1839_v46  ;;  %v1840_v21 = vadd.f32 %v2103_v58, %v1829_v38 }
 0x81d   : > { %1844 = vst.msk [vmem:[#allocation2 + $0x18] sm:$0xff] %vm761_vm1, %v1840_v21 }
 0x81e   : > { %2374 = shalt.err (!%p2371_p13)
}
 0x81f   : > { %s3036_s20 = sld [smem:[#allocation14_spill]] }
 0x825   : > { %s3037_s24 = smov %s3036_s20  ;;  %s2375_s7 = scalar_lea.hbm %s3036_s20, 512 }
 0x826   : > { %p2376_p0 = scmp.ne.s32.totalorder %s3037_s24, %s2375_s7  ;;  %p2381_p3 = scmp.lt.u32.totalorder %s2375_s7, %s3037_s24 }
 0x828   : > { %p2377_p1 = pnand %p2376_p0, %p2955_p6 }
 0x82a   : > { %p2378_p2 = pneg %p2377_p1 }
 0x82c   : > { %p2383_p4 = pnand %p2381_p3, %p2378_p2 }
 0x82e   : > { %2386 = shalt.err (!%p2383_p4)
}
 0x82f   : > { %s2418_s25 = smov 128   ;;  %s2419_s19 = smov 8  }
 0x830   : > { %2229 = dma.vmem_to_hbm [thread:$0]  (%p2955_p6), %s1855_s23, 512, %s3037_s24, [#allocation3], %s2418_s25, %s2418_s25, %s2419_s19  }
 0x831   : > { %2400 = dma.done.wait (%p2955_p6), [#allocation3], 512  }
 0x832   : > { %2402 = vsyncadd (%p2955_p6), [#allocation3], 4294966784 }
 0x833 PF: > { %s3038_s29 = sld [smem:[#allocation6_spill]]  ;;  %s3039_s18 = sld [smem:[#allocation5_spill]] }
 0x834   : > { %s3040_s19 = sld [smem:[#allocation7_spill]] }
 0x839   : > { %s26_s20 = sadd.s32 1, %s3038_s29  }
 0x83a   : > { %p23_p5 = scmp.ge.s32.totalorder %s26_s20, 4  }
 0x83c   :  { %25 = sbr.rel (!%p23_p5) target bundleno = 10 (0xa), region = 152 }
 0x843   :  { %1870 = vsyncpa [#allocation3], 1 }
 0x844   :  { %1872 = vsyncpa [#allocation3 + $0x1], 1 }

</bundles_post_ra>
